<compile_context>
chip_gen: v6e
topology: v6e:2x2x1
jax: 0.10.0
libtpu: 0.0.40
codegen_flags: <defaults>
</compile_context>

<pallas_src>
import math

import numpy as np
import jax
import jax.numpy as jnp
from jax.experimental import pallas as pl
from jax.experimental.pallas import tpu as pltpu

GENE_DIM = 2   # Net_GCN.gene_dim == GCNConv out_channels
LANE = 128     # lane width / padding unit (use 256 for max MXU fill on v6e/v7x)


def _round_up(x, m):
    return ((x + m - 1) // m) * m


def _pick_tile(total, max_tile, align, prefer_two_steps=False):
    """Largest multiple of `align` that divides `total` and is <= max_tile."""
    cands = [t for t in range(align, total + 1, align)
             if total % t == 0 and t <= max_tile]
    if not cands:
        return total
    if prefer_two_steps:
        two = [t for t in cands if total // t >= 2]
        if two:
            return max(two)
    return max(cands)


# -----------------------------------------------------------------------------
# Fused forward kernel
# grid = (batch tiles [parallel], cCRE tiles [arbitrary / reduction])
# -----------------------------------------------------------------------------
def net_gcn_kernel(x_ref, wtam_ref, gid_ref, bsub_ref, adjT_ref,
                   lin_ref, gbias_ref, wcat_ref, bout_ref, o_ref, acc_ref):
    k = pl.program_id(1)
    TP = x_ref.shape[2]        # cCRE tile width (lane-aligned)
    G_pad = acc_ref.shape[1]   # padded gene count

    @pl.when(k == 0)
    def _init():
        acc_ref[...] = jnp.zeros_like(acc_ref)

    # --- per-gene subnets on one cCRE tile of the reduction ---------------------
    start = pl.multiple_of(k * TP, 128)
    w = wtam_ref[:, pl.ds(start, TP)]                 # (T, TP) f32, resident weight
    xt = x_ref[...].astype(jnp.float32)               # bf16 stream -> f32 VPU math
    y = jnp.sum(xt * w[None, :, :], axis=1)           # (TB, TP) f32

    # Exact per-gene segment sums: build the 0/1 mask in-kernel (no HBM stream),
    # keep everything f32 so the accumulation matches the reference exactly.
    gid = gid_ref[pl.ds(start, TP), :]                                    # (TP, 1) i32
    cols = jax.lax.broadcasted_iota(jnp.int32, (TP, G_pad), 1)            # (TP, G_pad)
    mask = jnp.where(gid == cols, 1.0, 0.0).astype(jnp.float32)           # exact 0/1
    acc_ref[...] += jnp.dot(y, mask, preferred_element_type=jnp.float32)  # (TB, G_pad)

    # --- epilogue: everything downstream of the subnets, fully fused ------------
    @pl.when(k == pl.num_programs(1) - 1)
    def _finalize():
        # concat(subnet outputs) + bias, cat_activate (ReLU)
        x_cat = jnp.maximum(acc_ref[...] + bsub_ref[...], 0.0)            # (TB, G_pad)
        # GCNConv(1, gene_dim, add_self_loops=False): propagate the scalar node
        # feature with the precomputed symmetric norm (adjT[j, i] = d_j^-1/2 d_i^-1/2)
        z = jnp.dot(x_cat, adjT_ref[...],
                    preferred_element_type=jnp.float32)                   # (TB, G_pad)
        # lin (1 -> gene_dim), GCN bias, conv ReLU; then ONE fused output matmul over
        # the lane-concatenated channels (padded-gene rows of W_cat are zero).
        hs = [jnp.maximum(z * lin_ref[c] + gbias_ref[c], 0.0)
              for c in range(GENE_DIM)]
        h = jnp.concatenate(hs, axis=-1)                                  # (TB, 2*G_pad)
        o_ref[...] = (jnp.dot(h, wcat_ref[...],
                              preferred_element_type=jnp.float32)
                      + bout_ref[...])                                    # (TB, O_pad)


# -----------------------------------------------------------------------------
# Wrapper
# -----------------------------------------------------------------------------
def net_gcn_forward(x, ops, cfg, *, batch_tile=128, peak_tile=512):
    B, T, P = x.shape
    O = cfg["num_output"]
    P_pad = ops["W_tam"].shape[1]
    G_pad = ops["A_T"].shape[0]
    O_pad = ops["b_out"].shape[1]

    B_pad = _round_up(B, 8)
    TB = _pick_tile(B_pad, batch_tile, 8, prefer_two_steps=True)   # >=2 steps -> megacore
    TP = _pick_tile(P_pad, peak_tile, 128)

    # Stream x in bf16 (dominant HBM stream); pad batch (sublane) and cCRE (lane) axes.
    xb = x.astype(jnp.bfloat16)
    if B_pad != B or P_pad != P:
        xb = jnp.pad(xb, ((0, B_pad - B), (0, 0), (0, P_pad - P)))

    grid = (B_pad // TB, P_pad // TP)
    smem_spec = pl.BlockSpec(memory_space=pltpu.MemorySpace.SMEM)

    out = pl.pallas_call(
        net_gcn_kernel,
        out_shape=jax.ShapeDtypeStruct((B_pad, O_pad), jnp.float32),
        grid=grid,
        in_specs=[
            pl.BlockSpec((TB, T, TP), lambda bi, k: (bi, 0, k)),            # x tile (bf16)
            pl.BlockSpec((T, P_pad), lambda bi, k: (0, 0)),                 # W_tam, resident f32
            pl.BlockSpec((P_pad, 1), lambda bi, k: (0, 0)),                 # gene ids, resident i32
            pl.BlockSpec((1, G_pad), lambda bi, k: (0, 0)),                 # subnet biases
            pl.BlockSpec((G_pad, G_pad), lambda bi, k: (0, 0)),             # normalized adjacency^T
            smem_spec,                                                      # GCN lin weight (2,)
            smem_spec,                                                      # GCN bias (2,)
            pl.BlockSpec((GENE_DIM * G_pad, O_pad), lambda bi, k: (0, 0)),  # fused output weight
            pl.BlockSpec((1, O_pad), lambda bi, k: (0, 0)),                 # output bias
        ],
        out_specs=pl.BlockSpec((TB, O_pad), lambda bi, k: (bi, 0)),
        scratch_shapes=[pltpu.VMEM((TB, G_pad), jnp.float32)],              # x_cat accumulator
        compiler_params=pltpu.CompilerParams(
            dimension_semantics=("parallel", "arbitrary"),
            vmem_limit_bytes=56 * 1024 * 1024,
        ),
    )(xb, ops["W_tam"], ops["gene_id"], ops["b_sub"], ops["A_T"],
      ops["lin_w"], ops["gcn_bias"], ops["W_cat"], ops["b_out"])
    return out[:B, :O]


# -----------------------------------------------------------------------------
# Parameters (module-equivalent) and kernel-operand packing
# -----------------------------------------------------------------------------
def init_params(key, cfg):
    cut = cfg["cut"]
    G = len(cut) - 1
    T = cfg["num_tf"]
    O = cfg["num_output"]
    keys = jax.random.split(key, 2 * G + 5)

    sub_w, sub_b = [], []
    for i in range(G):
        fan_in = (cut[i + 1] - cut[i]) * T
        bound = 1.0 / math.sqrt(fan_in)
        sub_w.append(jax.random.uniform(keys[2 * i], (fan_in,), jnp.float32, -bound, bound))
        sub_b.append(jax.random.uniform(keys[2 * i + 1], (), jnp.float32, -bound, bound))

    k0 = 2 * G
    # GCNConv(1, gene_dim) lin weight with the module's custom init; bias ~ small.
    lin_w = jnp.stack([2.0 * jax.random.uniform(keys[k0], ()) + 0.1,
                       jax.random.uniform(keys[k0 + 1], (), minval=-2.0, maxval=2.0)])
    gcn_bias = 0.1 * jax.random.normal(keys[k0 + 2], (GENE_DIM,), jnp.float32)
    ob = 1.0 / math.sqrt(G * GENE_DIM)
    out_weight = jax.random.uniform(keys[k0 + 3], (O, G * GENE_DIM), jnp.float32, -ob, ob)
    out_bias = jax.random.uniform(keys[k0 + 4], (O,), jnp.float32, -ob, ob)
    return dict(sub_w=sub_w, sub_b=sub_b, lin_w=lin_w, gcn_bias=gcn_bias,
                out_weight=out_weight, out_bias=out_bias)


def build_kernel_operands(p, cfg):
    cut = cfg["cut"]
    G = len(cut) - 1
    T = cfg["num_tf"]
    P = cut[-1]
    O = cfg["num_output"]
    src = np.asarray(cfg["edge_index"][0])
    tgt = np.asarray(cfg["edge_index"][1])

    G_pad = _round_up(G, LANE)
    P_pad = _round_up(P, LANE)
    O_pad = _round_up(O, LANE)

    # Packed TAM weight (T, P_pad): column p carries only gene(p)'s weights, plus a
    # per-peak gene-id vector (padding -> -1 so padded peaks never match any gene).
    W_tam = np.zeros((T, P_pad), np.float32)
    gene_id = np.full((P_pad, 1), -1, np.int32)
    for i in range(G):
        npk = cut[i + 1] - cut[i]
        W_tam[:, cut[i]:cut[i + 1]] = np.asarray(p["sub_w"][i]).reshape(T, npk)
        gene_id[cut[i]:cut[i + 1], 0] = i

    b_sub = np.zeros((1, G_pad), np.float32)
    b_sub[0, :G] = np.asarray([float(b) for b in p["sub_b"]], np.float32)

    # gcn_norm with add_self_loops=False: deg[i] = #incoming edges,
    # A_T[j, i] = deg[j]^-1/2 * deg[i]^-1/2 for each edge j -> i; padded rows/cols zero.
    deg = np.zeros((G,), np.float64)
    np.add.at(deg, tgt, 1.0)
    dinv = np.where(deg > 0, 1.0 / np.sqrt(np.maximum(deg, 1e-12)), 0.0)
    A_T = np.zeros((G_pad, G_pad), np.float32)
    for s, t in zip(src, tgt):
        A_T[s, t] += dinv[s] * dinv[t]

    # Fused output weight: h is [channel0 genes | channel1 genes] along lanes, so
    # W_cat[c*G_pad + g, o] = W_out[o, g*GENE_DIM + c]; padded rows/cols are zero.
    W_out = np.asarray(p["out_weight"])                                  # (O, G*GENE_DIM)
    W_cat = np.zeros((GENE_DIM * G_pad, O_pad), np.float32)
    for c in range(GENE_DIM):
        W_cat[c * G_pad: c * G_pad + G, :O] = W_out[:, c::GENE_DIM].T
    b_out = np.zeros((1, O_pad), np.float32)
    b_out[0, :O] = np.asarray(p["out_bias"])

    return dict(
        W_tam=jnp.asarray(W_tam, jnp.float32),          # resident, loaded once -> keep f32 (exact)
        gene_id=jnp.asarray(gene_id),
        b_sub=jnp.asarray(b_sub),
        A_T=jnp.asarray(A_T, jnp.float32),
        lin_w=jnp.asarray(p["lin_w"], jnp.float32),     # SMEM scalars
        gcn_bias=jnp.asarray(p["gcn_bias"], jnp.float32),
        W_cat=jnp.asarray(W_cat, jnp.float32),
        b_out=jnp.asarray(b_out),
    )


# -----------------------------------------------------------------------------
# Pure-JAX reference (mirrors the PyTorch module, f32)
# -----------------------------------------------------------------------------
def reference_forward(x, p, cfg):
    B = x.shape[0]
    cut = cfg["cut"]
    G = len(cut) - 1
    src = jnp.asarray(cfg["edge_index"][0])
    tgt = jnp.asarray(cfg["edge_index"][1])
    E = src.shape[0]

    subs = []
    for i in range(G):
        xs = x[:, :, cut[i]:cut[i + 1]].reshape(B, -1)
        subs.append(xs @ p["sub_w"][i] + p["sub_b"][i])       # subNet: Linear only
    x_cat = jnp.maximum(jnp.stack(subs, axis=1), 0.0)         # cat_activate (ReLU)

    # GCNConv(1, gene_dim, add_self_loops=False, normalize=True) + bias
    xw = x_cat[:, :, None] * p["lin_w"][None, None, :]        # lin: (B, G, gene_dim)
    deg = jax.ops.segment_sum(jnp.ones((E,), jnp.float32), tgt, num_segments=G)
    dinv = jnp.where(deg > 0, jax.lax.rsqrt(jnp.maximum(deg, 1e-12)), 0.0)
    norm = dinv[src] * dinv[tgt]
    msg = xw[:, src, :] * norm[None, :, None]                 # (B, E, gene_dim)
    agg = jax.vmap(lambda m: jax.ops.segment_sum(m, tgt, num_segments=G))(msg)
    h = jnp.maximum(agg + p["gcn_bias"][None, None, :], 0.0)  # conv_activate (ReLU)
    return h.reshape(B, -1) @ p["out_weight"].T + p["out_bias"]


# -----------------------------------------------------------------------------
if __name__ == "__main__":
    cfg = dict(
        num_tf=16,
        # 6 genes, 512 total cCREs (contiguous cuts)
        cut=[0, 96, 180, 256, 352, 420, 512],
        num_output=3,
        # small undirected PPI-like graph (both directions listed), 16 directed edges
        edge_index=(np.array([0, 1, 1, 2, 2, 3, 3, 4, 4, 5, 0, 3, 1, 4, 2, 5], np.int32),
                    np.array([1, 0, 2, 1, 3, 2, 4, 3, 5, 4, 3, 0, 4, 1, 5, 2], np.int32)),
    )
    B = 16
    total_peaks = cfg["cut"][-1]

    key = jax.random.PRNGKey(0)
    k_param, k_x = jax.random.split(key)
    params = init_params(k_param, cfg)
    ops = build_kernel_operands(params, cfg)

    x = jax.random.normal(k_x, (B, cfg["num_tf"], total_peaks), jnp.float32)

    out = jax.block_until_ready(net_gcn_forward(x, ops, cfg))
    ref = jax.block_until_ready(reference_forward(x, params, cfg))

    # Only approximation vs. the f32 reference is the bf16 quantization of streamed x.
    np.testing.assert_allclose(np.asarray(out), np.asarray(ref), rtol=2e-2, atol=2e-2)

    print("KERNEL_OK")
</pallas_src>

<mosaic_0001>
module attributes {stable_mosaic.version = 11 : i64} {
  func.func @net_gcn_kernel(%arg0: i32, %arg1: i32, %arg2: memref<8x16x512xbf16, #tpu.memory_space<vmem>>, %arg3: memref<16x512xf32, #tpu.memory_space<vmem>>, %arg4: memref<512x1xi32, #tpu.memory_space<vmem>>, %arg5: memref<1x128xf32, #tpu.memory_space<vmem>>, %arg6: memref<128x128xf32, #tpu.memory_space<vmem>>, %arg7: memref<2xf32, #tpu.memory_space<smem>>, %arg8: memref<2xf32, #tpu.memory_space<smem>>, %arg9: memref<256x128xf32, #tpu.memory_space<vmem>>, %arg10: memref<1x128xf32, #tpu.memory_space<vmem>>, %arg11: memref<8x128xf32, #tpu.memory_space<vmem>>, %arg12: memref<8x128xf32, #tpu.memory_space<vmem>>) attributes {dimension_semantics = [#tpu.dimension_semantics<parallel>, #tpu.dimension_semantics<arbitrary>], iteration_bounds = array<i64: 2, 1>, scalar_prefetch = 0 : i64, scratch_operands = 1 : i64, tpu.core_type = #tpu.core_type<tc>, window_params = [{transform_indices = @transform_0, window_bounds = array<i64: 8, 16, 512>}, {pipeline_mode = #tpu.pipeline_mode<synchronous>, transform_indices = @transform_1, window_bounds = array<i64: 16, 512>}, {pipeline_mode = #tpu.pipeline_mode<synchronous>, transform_indices = @transform_2, window_bounds = array<i64: 512, 1>}, {pipeline_mode = #tpu.pipeline_mode<synchronous>, transform_indices = @transform_3, window_bounds = array<i64: 1, 128>}, {pipeline_mode = #tpu.pipeline_mode<synchronous>, transform_indices = @transform_4, window_bounds = array<i64: 128, 128>}, {transform_indices = @transform_5, window_bounds = array<i64: 2>}, {transform_indices = @transform_6, window_bounds = array<i64: 2>}, {pipeline_mode = #tpu.pipeline_mode<synchronous>, transform_indices = @transform_7, window_bounds = array<i64: 256, 128>}, {pipeline_mode = #tpu.pipeline_mode<synchronous>, transform_indices = @transform_8, window_bounds = array<i64: 1, 128>}, {transform_indices = @transform_9, window_bounds = array<i64: 8, 128>}]} {
    %c0_i32 = arith.constant 0 : i32
    %0 = arith.cmpi eq, %arg1, %c0_i32 : i32
    %1 = arith.extui %0 : i1 to i32
    %c0_i32_0 = arith.constant 0 : i32
    %2 = arith.cmpi ne, %1, %c0_i32_0 : i32
    scf.if %2 {
      %cst_14 = arith.constant 0.000000e+00 : f32
      %28 = vector.broadcast %cst_14 : f32 to vector<8x128xf32>
      %c0_15 = arith.constant 0 : index
      %c0_16 = arith.constant 0 : index
      %29 = vector.load %arg12[%c0_15, %c0_16] : memref<8x128xf32, #tpu.memory_space<vmem>>, vector<8x128xf32>
      tpu.vector_store %arg12[%c0_15, %c0_16], %28 {strides = array<i32>} : memref<8x128xf32, #tpu.memory_space<vmem>>, vector<8x128xf32>,
    } else {
    }
    %c512_i32 = arith.constant 512 : i32
    %3 = arith.muli %arg1, %c512_i32 : i32
    %4 = tpu.assume_multiple %3, 128 : i32
    %c0 = arith.constant 0 : index
    %5 = arith.index_cast %4 : i32 to index
    %6 = vector.load %arg3[%c0, %5] : memref<16x512xf32, #tpu.memory_space<vmem>>, vector<16x512xf32>
    %c0_1 = arith.constant 0 : index
    %c0_2 = arith.constant 0 : index
    %c0_3 = arith.constant 0 : index
    %7 = vector.load %arg2[%c0_1, %c0_2, %c0_3] : memref<8x16x512xbf16, #tpu.memory_space<vmem>>, vector<8x16x512xbf16>
    %8 = arith.extf %7 : vector<8x16x512xbf16> to vector<8x16x512xf32>
    %9 = vector.shape_cast %6 : vector<16x512xf32> to vector<1x16x512xf32>
    %10 = vector.broadcast %9 : vector<1x16x512xf32> to vector<8x16x512xf32>
    %11 = arith.mulf %8, %10 : vector<8x16x512xf32>
    %cst = arith.constant dense<0.000000e+00> : vector<8x512xf32>
    %12 = vector.multi_reduction <add>, %11, %cst [1] : vector<8x16x512xf32> to vector<8x512xf32>
    %13 = arith.index_cast %4 : i32 to index
    %c0_4 = arith.constant 0 : index
    %14 = vector.load %arg4[%13, %c0_4] : memref<512x1xi32, #tpu.memory_space<vmem>>, vector<512x1xi32>
    %15 = tpu.iota {dimensions = array<i32: 1>} : vector<512x128xi32>
    %16 = vector.broadcast %14 : vector<512x1xi32> to vector<512x128xi32>
    %17 = arith.cmpi eq, %16, %15 : vector<512x128xi32>
    %cst_5 = arith.constant 1.000000e+00 : f32
    %cst_6 = arith.constant 0.000000e+00 : f32
    %18 = vector.broadcast %cst_5 : f32 to vector<512x128xf32>
    %19 = vector.broadcast %cst_6 : f32 to vector<512x128xf32>
    %20 = arith.select %17, %18, %19 : vector<512x128xi1>, vector<512x128xf32>
    %c0_7 = arith.constant 0 : index
    %c0_8 = arith.constant 0 : index
    %21 = vector.load %arg12[%c0_7, %c0_8] : memref<8x128xf32, #tpu.memory_space<vmem>>, vector<8x128xf32>
    %cst_9 = arith.constant dense<0.000000e+00> : vector<8x128xf32>
    %22 = tpu.matmul %12, %20, %cst_9 {dimension_numbers = #tpu.dot_dimension_numbers<[1], [0], [0], [1], [0, 0, 1, 1], [], []>} : vector<8x512xf32>, vector<512x128xf32>, vector<8x128xf32> -> vector<8x128xf32>
    %23 = arith.addf %21, %22 : vector<8x128xf32>
    %c0_10 = arith.constant 0 : index
    %c0_11 = arith.constant 0 : index
    %24 = vector.load %arg12[%c0_10, %c0_11] : memref<8x128xf32, #tpu.memory_space<vmem>>, vector<8x128xf32>
    tpu.vector_store %arg12[%c0_10, %c0_11], %23 {strides = array<i32>} : memref<8x128xf32, #tpu.memory_space<vmem>>, vector<8x128xf32>,
    %c0_i32_12 = arith.constant 0 : i32
    %25 = arith.cmpi eq, %arg1, %c0_i32_12 : i32
    %26 = arith.extui %25 : i1 to i32
    %c0_i32_13 = arith.constant 0 : i32
    %27 = arith.cmpi ne, %26, %c0_i32_13 : i32
    scf.if %27 {
      %c0_14 = arith.constant 0 : index
      %c0_15 = arith.constant 0 : index
      %28 = vector.load %arg12[%c0_14, %c0_15] : memref<8x128xf32, #tpu.memory_space<vmem>>, vector<8x128xf32>
      %c0_16 = arith.constant 0 : index
      %c0_17 = arith.constant 0 : index
      %29 = vector.load %arg5[%c0_16, %c0_17] : memref<1x128xf32, #tpu.memory_space<vmem>>, vector<1x128xf32>
      %30 = vector.broadcast %29 : vector<1x128xf32> to vector<8x128xf32>
      %31 = arith.addf %28, %30 : vector<8x128xf32>
      %cst_18 = arith.constant 0.000000e+00 : f32
      %32 = vector.broadcast %cst_18 : f32 to vector<8x128xf32>
      %33 = arith.maximumf %31, %32 : vector<8x128xf32>
      %c0_19 = arith.constant 0 : index
      %c0_20 = arith.constant 0 : index
      %34 = vector.load %arg6[%c0_19, %c0_20] : memref<128x128xf32, #tpu.memory_space<vmem>>, vector<128x128xf32>
      %cst_21 = arith.constant dense<0.000000e+00> : vector<8x128xf32>
      %35 = tpu.matmul %33, %34, %cst_21 {dimension_numbers = #tpu.dot_dimension_numbers<[1], [0], [0], [1], [0, 0, 1, 1], [], []>} : vector<8x128xf32>, vector<128x128xf32>, vector<8x128xf32> -> vector<8x128xf32>
      %c0_22 = arith.constant 0 : index
      %36 = memref.load %arg7[%c0_22] : memref<2xf32, #tpu.memory_space<smem>>
      %37 = vector.broadcast %36 : f32 to vector<8x128xf32>
      %38 = arith.mulf %35, %37 : vector<8x128xf32>
      %c0_23 = arith.constant 0 : index
      %39 = memref.load %arg8[%c0_23] : memref<2xf32, #tpu.memory_space<smem>>
      %40 = vector.broadcast %39 : f32 to vector<8x128xf32>
      %41 = arith.addf %38, %40 : vector<8x128xf32>
      %cst_24 = arith.constant 0.000000e+00 : f32
      %42 = vector.broadcast %cst_24 : f32 to vector<8x128xf32>
      %43 = arith.maximumf %41, %42 : vector<8x128xf32>
      %c1 = arith.constant 1 : index
      %44 = memref.load %arg7[%c1] : memref<2xf32, #tpu.memory_space<smem>>
      %45 = vector.broadcast %44 : f32 to vector<8x128xf32>
      %46 = arith.mulf %35, %45 : vector<8x128xf32>
      %c1_25 = arith.constant 1 : index
      %47 = memref.load %arg8[%c1_25] : memref<2xf32, #tpu.memory_space<smem>>
      %48 = vector.broadcast %47 : f32 to vector<8x128xf32>
      %49 = arith.addf %46, %48 : vector<8x128xf32>
      %cst_26 = arith.constant 0.000000e+00 : f32
      %50 = vector.broadcast %cst_26 : f32 to vector<8x128xf32>
      %51 = arith.maximumf %49, %50 : vector<8x128xf32>
      %52 = tpu.concatenate %43, %51 in 1 : vector<8x128xf32>, vector<8x128xf32> -> vector<8x256xf32>
      %c0_27 = arith.constant 0 : index
      %c0_28 = arith.constant 0 : index
      %53 = vector.load %arg9[%c0_27, %c0_28] : memref<256x128xf32, #tpu.memory_space<vmem>>, vector<256x128xf32>
      %cst_29 = arith.constant dense<0.000000e+00> : vector<8x128xf32>
      %54 = tpu.matmul %52, %53, %cst_29 {dimension_numbers = #tpu.dot_dimension_numbers<[1], [0], [0], [1], [0, 0, 1, 1], [], []>} : vector<8x256xf32>, vector<256x128xf32>, vector<8x128xf32> -> vector<8x128xf32>
      %c0_30 = arith.constant 0 : index
      %c0_31 = arith.constant 0 : index
      %55 = vector.load %arg10[%c0_30, %c0_31] : memref<1x128xf32, #tpu.memory_space<vmem>>, vector<1x128xf32>
      %56 = vector.broadcast %55 : vector<1x128xf32> to vector<8x128xf32>
      %57 = arith.addf %54, %56 : vector<8x128xf32>
      %c0_32 = arith.constant 0 : index
      %c0_33 = arith.constant 0 : index
      %58 = vector.load %arg11[%c0_32, %c0_33] : memref<8x128xf32, #tpu.memory_space<vmem>>, vector<8x128xf32>
      tpu.vector_store %arg11[%c0_32, %c0_33], %57 {strides = array<i32>} : memref<8x128xf32, #tpu.memory_space<vmem>>, vector<8x128xf32>,
    } else {
    }
    return
  }
  func.func @transform_0(%arg0: i32, %arg1: i32) -> (i32, i32, i32) {
    %c0_i32 = arith.constant 0 : i32
    %c0_i32_0 = arith.constant 0 : i32
    return %arg0, %c0_i32, %arg1 : i32, i32, i32
  }
  func.func @transform_1(%arg0: i32, %arg1: i32) -> (i32, i32) {
    %c0_i32 = arith.constant 0 : i32
    %c0_i32_0 = arith.constant 0 : i32
    %c0_i32_1 = arith.constant 0 : i32
    return %c0_i32, %c0_i32_0 : i32, i32
  }
  func.func @transform_2(%arg0: i32, %arg1: i32) -> (i32, i32) {
    %c0_i32 = arith.constant 0 : i32
    %c0_i32_0 = arith.constant 0 : i32
    %c0_i32_1 = arith.constant 0 : i32
    return %c0_i32, %c0_i32_0 : i32, i32
  }
  func.func @transform_3(%arg0: i32, %arg1: i32) -> (i32, i32) {
    %c0_i32 = arith.constant 0 : i32
    %c0_i32_0 = arith.constant 0 : i32
    %c0_i32_1 = arith.constant 0 : i32
    return %c0_i32, %c0_i32_0 : i32, i32
  }
  func.func @transform_4(%arg0: i32, %arg1: i32) -> (i32, i32) {
    %c0_i32 = arith.constant 0 : i32
    %c0_i32_0 = arith.constant 0 : i32
    %c0_i32_1 = arith.constant 0 : i32
    return %c0_i32, %c0_i32_0 : i32, i32
  }
  func.func @transform_5(%arg0: i32, %arg1: i32) -> i32 {
    %c0_i32 = arith.constant 0 : i32
    %c0_i32_0 = arith.constant 0 : i32
    return %c0_i32 : i32
  }
  func.func @transform_6(%arg0: i32, %arg1: i32) -> i32 {
    %c0_i32 = arith.constant 0 : i32
    %c0_i32_0 = arith.constant 0 : i32
    return %c0_i32 : i32
  }
  func.func @transform_7(%arg0: i32, %arg1: i32) -> (i32, i32) {
    %c0_i32 = arith.constant 0 : i32
    %c0_i32_0 = arith.constant 0 : i32
    %c0_i32_1 = arith.constant 0 : i32
    return %c0_i32, %c0_i32_0 : i32, i32
  }
  func.func @transform_8(%arg0: i32, %arg1: i32) -> (i32, i32) {
    %c0_i32 = arith.constant 0 : i32
    %c0_i32_0 = arith.constant 0 : i32
    %c0_i32_1 = arith.constant 0 : i32
    return %c0_i32, %c0_i32_0 : i32, i32
  }
  func.func @transform_9(%arg0: i32, %arg1: i32) -> (i32, i32) {
    %c0_i32 = arith.constant 0 : i32
    %c0_i32_0 = arith.constant 0 : i32
    return %arg0, %c0_i32 : i32, i32
  }
}

</mosaic_0001>

<bundles_post_ra>
// kernel: tpu_custom_call.1
= control target key start
LH: loop header
LB: loop body
LE: loop exit
PB: predicated region body
PF: predicated region fallthrough
CT: control target
= control target key end

     0   :  { %14 = vsyncpa [#allocation4], 0  ;;  %s3151_s0 = inlined_call_operand.vmem [shape: bf16[16,16,512], index: 0, kind: input, shape index: {}]   ;;  %s3152_s1 = inlined_call_operand.hbm [shape: f32[16,512], index: 1, kind: input, shape index: {}]   ;;  %s3153_s2 = inlined_call_operand.vmem [shape: s32[512,1], index: 2, kind: input, shape index: {}]   ;;  %s3154_s3 = inlined_call_operand.vmem [shape: f32[1,128], index: 3, kind: input, shape index: {}]   ;;  %s3155_s4 = inlined_call_operand.hbm [shape: f32[128,128], index: 4, kind: input, shape index: {}]   ;;  %s3156_s5 = inlined_call_operand.vmem [shape: f32[2], index: 5, kind: input, shape index: {}]   ;;  %s3157_s6 = inlined_call_operand.vmem [shape: f32[2], index: 6, kind: input, shape index: {}]   ;;  %s3158_s7 = inlined_call_operand.hbm [shape: f32[256,128], index: 7, kind: input, shape index: {}]   ;;  %s3159_s8 = inlined_call_operand.vmem [shape: f32[1,128], index: 8, kind: input, shape index: {}]   ;;  %s3160_s9 = inlined_call_operand.hbm [shape: f32[16,128], index: 9, kind: output, shape index: {}]  }
   0x1   :  { %15 = vsyncpa [#allocation8], 0 }
   0x2   :  { %16 = vsyncpa [#allocation6], 0 }
   0x3   :  { %17 = vsyncpa [#allocation11], 0 }
   0x4   :  { %18 = vsyncpa [#allocation5], 0 }
   0x5   :  { %20 = vsyncpa [#allocation5 + $0x1], 0  ;;  %s2440_s30 = smov 0   ;;  %s2442_s10 = smov 0  }
   0x6   :  { %s2444_s11 = smov 0   ;;  %s2446_s12 = smov 0  }
   0x7   :  { %s2448_s13 = smov 0   ;;  %s2450_s14 = smov 0  }
   0x8 LB: > { %3175 = sst [smem:[#allocation20_spill]] %s2362_s11  ;;  %s1805_s15 = sadd.s32 4294967295, %s2374_s14   ;;  %s2374_s14 = sphi %s2450_s14, %s26_s14   ;;  %s2370_s13 = sphi %s2448_s13, %s3205_s13   ;;  %s2366_s12 = sphi %s2446_s12, %s3201_s12   ;;  %s2362_s11 = sphi %s2444_s11, %s3200_s11   ;;  %s2358_s10 = sphi %s2442_s10, %s3204_s10   ;;  %s2354_s30 = sphi %s2440_s30, %s3203_s30  }
   0x9   : > { %3176 = sst [smem:[#allocation21_spill]] %s2370_s13  ;;  %s1806_s16 = sadd.s32 4294967294, %s2374_s14  }
   0xa   : > { %s38_s17 = sadd.s32 1, %s2370_s13  ;;  %s241_s18 = sadd.s32 1, %s2362_s11 }
   0xb   : > { %p40_p0 = scmp.ge.s32.totalorder %s38_s17, 2  ;;  %p251_p1 = scmp.ne.s32.totalorder %s2362_s11, %s2358_s10 }
   0xc   : > { %p252_p2 = scmp.eq.s32.totalorder %s1805_s15, 1  ;;  %p257_p3 = scmp.ne.s32.totalorder %s2358_s10, %s2354_s30 }
   0xd   : > { %s3207_s17 = smov (%p40_p0, %s38_s17), 0  ;;  %p258_p5 = scmp.eq.s32.totalorder %s1806_s16, 1 }
   0xe   : > { %3177 = sst [smem:[#allocation22_spill]] %s3207_s17  ;;  %p2480_p4 = por %p252_p2, %p251_p1 }
   0xf   : > { %s238_s20 = ssub.s32 %s2370_s13, %s3207_s17  ;;  %p1807_p6 = scmp.ge.s32.totalorder %s2374_s14, 1 }
  0x10   : > { %s3178_s19 = scalar_select %p2480_p4, 1, 0 }
  0x11   : > { %p239_p7 = scmp.eq.s32.totalorder %s238_s20, 0  ;;  %p2487_p8 = por %p258_p5, %p257_p3 }
  0x12   : > { %p265_p9 = scmp.lt.s32.totalorder %s2374_s14, 3  ;;  %p2499_p11 = scmp.eq.s32.totalorder %s1805_s15, 0 }
  0x13   : > { %s3179_s21 = scalar_select %p2487_p8, 1, 0 }
  0x14   : > { %s2493_s22 = scalar_select %p239_p7, %s2362_s11, %s241_s18  }
  0x15   : > { %p2495_p10 = pnand %p1807_p6, %p265_p9  ;;  %s2376_s25 = smov [#allocation7]  }
  0x16   : > { %3180 = sst [smem:[#allocation23_spill]] %s2493_s22  ;;  %s296_s26 = sshll.u32 %s2376_s25, 4  ;;  %s297_s26 = int_to_ptr.vmem [resolvable:$true] %s296_s26 }
  0x17   : > { %s3181_s23 = scalar_select %p2495_p10, 1, 0 }
  0x18   : > { %s3182_s24 = scalar_select %p2499_p11, 1, 0 }
  0x19   : > { %p2076_p12 = pneg %p2495_p10  ;;  %s2377_s28 = smov [#allocation3]  }
  0x1a   : > { %s277_s29 = sshll.u32 %s2377_s28, 4  ;;  %s2181_s16 = scalar_lea.vmem %s297_s26, 2048  ;;  %s278_s29 = int_to_ptr.vmem [resolvable:$true] %s277_s29 }
  0x1b   : > { %p2507_p13 = pnand %p2499_p11, %p2076_p12  ;;  %p2182_p1 = scmp.ne.s32.totalorder %s297_s26, %s2181_s16 }
  0x1c   : > { %p2189_p5 = scmp.lt.s32.totalorder %s297_s26, %s297_s26  ;;  %p2190_p6 = scmp.lt.s32.totalorder %s2181_s16, %s2181_s16 }
  0x1d   : > { %p2513_p0 = pneg %p2507_p13 }
  0x1e   : > { %p2191_p7 = por %p2190_p6, %p2189_p5 }
  0x1f   : > { %p2184_p2 = pnand %p2182_p1, %p2513_p0 }
  0x21   : > { %p2185_p3 = pneg %p2184_p2 }
  0x23   : > { %p2192_p9 = pnand %p2191_p7, %p2185_p3 }
  0x25   : > { %2195 = shalt.err (!%p2192_p9)
}
  0x26   : > { %s3165_s18 = smov 128   ;;  %s2379_s20 = smov 8  }
  0x27   : > { %2082 = dma.hbm_to_vmem [thread:$0]  (!%p2507_p13), %s3155_s4, 2048, %s297_s26, [#allocation8], %s3165_s18, %s3165_s18, %s2379_s20  }
  0x28   : > { %s310_s16 = sshll.u32 %s3156_s5, 4  ;;  %s2207_s22 = scalar_lea.vmem %s278_s29, 1024  ;;  %s311_s16 = int_to_ptr.vmem [resolvable:$true] %s310_s16 }
  0x29   : > { %p2208_p12 = scmp.ne.s32.totalorder %s278_s29, %s2207_s22  ;;  %p2215_p3 = scmp.lt.s32.totalorder %s278_s29, %s278_s29 }
  0x2a   : > { %p2216_p5 = scmp.lt.s32.totalorder %s2207_s22, %s2207_s22 }
  0x2b   : > { %p2210_p1 = pnand %p2208_p12, %p2513_p0 }
  0x2c   : > { %p2217_p6 = por %p2216_p5, %p2215_p3 }
  0x2d   : > { %p2211_p2 = pneg %p2210_p1 }
  0x2f   : > { %p2218_p7 = pnand %p2217_p6, %p2211_p2 }
  0x31   : > { %2221 = shalt.err (!%p2218_p7)
}
  0x32   : > { %s2380_s11 = smov 512   ;;  %s2381_s25 = smov 32  }
  0x33   : > { %2079 = dma.hbm_to_vmem [thread:$0]  (!%p2507_p13), %s3152_s1, 1024, %s278_s29, [#allocation4], %s2380_s11, %s2380_s11, %s2381_s25  }
  0x34   : > { %s2222_s13 = scalar_lea.vmem %s311_s16, 16  ;;  %p2230_p8 = scmp.lt.s32.totalorder %s311_s16, %s311_s16 }
  0x35   : > { %p2223_p9 = scmp.ne.s32.totalorder %s311_s16, %s2222_s13  ;;  %p2231_p4 = scmp.lt.s32.totalorder %s2222_s13, %s2222_s13 }
  0x37   : > { %p2225_p12 = pnand %p2223_p9, %p2513_p0  ;;  %p2232_p3 = por %p2231_p4, %p2230_p8 }
  0x39   : > { %p2226_p1 = pneg %p2225_p12 }
  0x3b   : > { %p2233_p2 = pnand %p2232_p3, %p2226_p1 }
  0x3d   : > { %2236 = shalt.err (!%p2233_p2)
}
  0x3e   : > { %s2382_s17 = smov [#allocation9]   ;;  %s321_s11 = sshll.u32 %s3157_s6, 4  ;;  %s322_s11 = int_to_ptr.vmem [resolvable:$true] %s321_s11 }
  0x3f   : > { %2085 = dma.vmem_to_smem (!%p2507_p13), %s311_s16, 16, %s2382_s17, [#allocation6]  }
  0x40   : > { %s2237_s29 = scalar_lea.vmem %s322_s11, 16  ;;  %p2245_p9 = scmp.lt.s32.totalorder %s322_s11, %s322_s11 }
  0x41   : > { %p2238_p5 = scmp.ne.s32.totalorder %s322_s11, %s2237_s29  ;;  %p2246_p12 = scmp.lt.s32.totalorder %s2237_s29, %s2237_s29 }
  0x43   : > { %p2240_p6 = pnand %p2238_p5, %p2513_p0  ;;  %p2247_p4 = por %p2246_p12, %p2245_p9 }
  0x45   : > { %p2241_p7 = pneg %p2240_p6 }
  0x47   : > { %p2248_p8 = pnand %p2247_p4, %p2241_p7 }
  0x49   : > { %2251 = shalt.err (!%p2248_p8)
}
  0x4a   : > { %s2383_s25 = smov [#allocation10]   ;;  %s2384_s16 = smov [#allocation12]  }
  0x4b   : > { %2088 = dma.vmem_to_smem (!%p2507_p13), %s322_s11, 16, %s2383_s25, [#allocation11]  }
  0x4c   : > { %s331_s26 = sshll.u32 %s2384_s16, 4  ;;  %s332_s26 = int_to_ptr.vmem [resolvable:$true] %s331_s26 }
  0x4d   : > { %s2263_s18 = scalar_lea.vmem %s332_s26, 4096  ;;  %p2271_p5 = scmp.lt.s32.totalorder %s332_s26, %s332_s26 }
  0x4e   : > { %p2264_p1 = scmp.ne.s32.totalorder %s332_s26, %s2263_s18  ;;  %p2272_p6 = scmp.lt.s32.totalorder %s2263_s18, %s2263_s18 }
  0x50   : > { %p2266_p3 = pnand %p2264_p1, %p2513_p0  ;;  %p2273_p11 = por %p2272_p6, %p2271_p5 }
  0x52   : > { %p2267_p2 = pneg %p2266_p3 }
  0x54   : > { %p2274_p10 = pnand %p2273_p11, %p2267_p2 }
  0x56   : > { %2277 = shalt.err (!%p2274_p10)
}
  0x57   : > { %s3185_s28 = smov 128   ;;  %p3186_p7 = scmp.ne.s32.totalorder %s3181_s23, 0 }
  0x58   : > { %2091 = dma.hbm_to_vmem [thread:$0]  (!%p2507_p13), %s3158_s7, 4096, %s332_s26, [#allocation8], %s3185_s28, %s3185_s28, %s2379_s20  }
  0x59   : > { %365 = sbr.rel (%p3186_p7) target bundleno = 974 (0x3ce), region = 56 }
  0x5e   : > { %p3187_p0 = scmp.ne.s32.totalorder %s3182_s24, 0 }
  0x60   : > { %2329 = dma.done.wait (%p3187_p0), [#allocation4], 1024  }
  0x61   : > { %2331 = vsyncadd (%p3187_p0), [#allocation4], 4294966272 }
  0x62   : > { %2333 = dma.done.wait (%p3187_p0), [#allocation8], 2048  }
  0x63   : > { %2335 = vsyncadd (%p3187_p0), [#allocation8], 4294965248 }
  0x64   : > { %2337 = dma.done.wait (%p3187_p0), [#allocation6], 16  }
  0x65   : > { %2339 = vsyncadd (%p3187_p0), [#allocation6], 4294967280 }
  0x66   : > { %2341 = dma.done.wait (%p3187_p0), [#allocation11], 16  }
  0x67   : > { %2343 = vsyncadd (%p3187_p0), [#allocation11], 4294967280 }
  0x68   : > { %2345 = dma.done.wait (%p3187_p0), [#allocation8], 4096  }
  0x69   : > { %2347 = vsyncadd (%p3187_p0), [#allocation8], 4294963200 }
  0x6a   : > { %387 = sfence }
  0x6b   : > { %v869_v0 = vld [vmem:[%s3153_s2 + $0xf8] sm:$0xff]  ;;  %v2385_v2 = vmov 0   ;;  %v868_v5 = vld [vmem:[%s3153_s2 + $0xf0] sm:$0xff]  ;;  %v899_v9 = vld [vmem:[%s3153_s2 + $0x1e8] sm:$0xff]  ;;  %s1821_s15 = sshll.u32 %s2366_s12, 3  ;;  %v902_v51 = vlaneseq  ;;  %vm1257_vm0 = vcmask 1041409  }
  0x6c   : > { %v853_v1 = vld [vmem:[%s3153_s2 + $0x78] sm:$0xff]  ;;  %2169 = vset.pattern.permute.xlu1 %v2385_v2  ;;  %2168 = vset.pattern.permute.xlu0 %v2385_v2  ;;  %v900_v6 = vld [vmem:[%s3153_s2 + $0x1f0] sm:$0xff]  ;;  %v867_v10 = vld [vmem:[%s3153_s2 + $0xe8] sm:$0xff]  ;;  %p425_p10 = scmp.lt.s32.totalorder %s1821_s15, 15  ;;  %vm1259_vm1 = vcmask 1042434   ;;  %vm1261_vm2 = vcmask 1043459  }
  0x6d   : > { %998 = vperm.xlu0 %2168, %v869_v0   ;;  %950 = vperm.xlu1 %2169, %v853_v1   ;;  %v901_v3 = vld [vmem:[%s3153_s2 + $0x1f8] sm:$0xff]  ;;  %v884_v7 = vld [vmem:[%s3153_s2 + $0x170] sm:$0xff]  ;;  %v883_v11 = vld [vmem:[%s3153_s2 + $0x168] sm:$0xff]  ;;  %v2763_v63 = vand.u32 127, %v902_v51  ;;  %vm1263_vm3 = vcmask 1044484   ;;  %vm1265_vm4 = vcmask 1045509  }
  0x6e   : > { %v885_v4 = vld [vmem:[%s3153_s2 + $0x178] sm:$0xff]  ;;  %v852_v8 = vld [vmem:[%s3153_s2 + $0x70] sm:$0xff]  ;;  %v851_v12 = vld [vmem:[%s3153_s2 + $0x68] sm:$0xff]  ;;  %s3209_s15 = smov (!%p425_p10, %s1821_s15), 15  ;;  %vm1267_vm5 = vcmask 1046534   ;;  %vm1269_vm6 = vcmask 1047559  }
  0x6f   : > { %v898_v13 = vld [vmem:[%s3153_s2 + $0x1e0] sm:$0xff]  ;;  %v897_v17 = vld [vmem:[%s3153_s2 + $0x1d8] sm:$0xff]  ;;  %v896_v21 = vld [vmem:[%s3153_s2 + $0x1d0] sm:$0xff]  ;;  %s1896_s18 = sshll.u32 %s3209_s15, 5  ;;  %s1537_s27 = sld [smem:[#allocation9]] }
  0x70   : > { %v866_v14 = vld [vmem:[%s3153_s2 + $0xe0] sm:$0xff]  ;;  %v865_v18 = vld [vmem:[%s3153_s2 + $0xd8] sm:$0xff]  ;;  %v864_v22 = vld [vmem:[%s3153_s2 + $0xd0] sm:$0xff]  ;;  %s2734_s17 = scalar_lea.vmem %s3151_s0, %s1896_s18  ;;  %s1889_s20 = sld [smem:[#allocation9 + $0x1]] }
  0x71   : > { %1094 = vperm.xlu0 %2168, %v901_v3   ;;  %1046 = vperm.xlu1 %2169, %v885_v4   ;;  %v882_v15 = vld [vmem:[%s3153_s2 + $0x160] sm:$0xff]  ;;  %v881_v19 = vld [vmem:[%s3153_s2 + $0x158] sm:$0xff]  ;;  %v880_v23 = vld [vmem:[%s3153_s2 + $0x150] sm:$0xff]  ;;  %s1540_s22 = sld [smem:[#allocation10]]  ;;  %s420_s11 = sand.u32 1, %s2358_s10  }
  0x72   : > { %v850_v16 = vld [vmem:[%s3153_s2 + $0x60] sm:$0xff]  ;;  %v849_v20 = vld [vmem:[%s3153_s2 + $0x58] sm:$0xff]  ;;  %v848_v24 = vld [vmem:[%s3153_s2 + $0x50] sm:$0xff]  ;;  %s1890_s15 = sld [smem:[#allocation10 + $0x1]]  ;;  %s1820_s24 = sshll.u32 %s420_s11, 3 }
  0x73   : > { %v895_v25 = vld [vmem:[%s3153_s2 + $0x1c8] sm:$0xff]  ;;  %v894_v29 = vld [vmem:[%s3153_s2 + $0x1c0] sm:$0xff]  ;;  %v893_v33 = vld [vmem:[%s3153_s2 + $0x1b8] sm:$0xff]  ;;  %s1893_s16 = sshll.u32 %s2366_s12, 7  ;;  %s422_s26 = scalar_lea.vmem [#allocation13], %s1820_s24 }
  0x74   : > { %v863_v26 = vld [vmem:[%s3153_s2 + $0xc8] sm:$0xff]  ;;  %v862_v30 = vld [vmem:[%s3153_s2 + $0xc0] sm:$0xff]  ;;  %v861_v34 = vld [vmem:[%s3153_s2 + $0xb8] sm:$0xff]  ;;  %s1675_s18 = sshll.u32 %s422_s26, 4  ;;  %s1662_s23 = scalar_lea.sflag [#allocation5], %s420_s11  ;;  %s1676_s18 = int_to_ptr.vmem [resolvable:$true] %s1675_s18 }
  0x75   : > { %995 = vperm.xlu0 %2168, %v868_v5   ;;  %1091 = vperm.xlu1 %2169, %v900_v6   ;;  %v879_v27 = vld [vmem:[%s3153_s2 + $0x148] sm:$0xff]  ;;  %v878_v31 = vld [vmem:[%s3153_s2 + $0x140] sm:$0xff]  ;;  %v877_v35 = vld [vmem:[%s3153_s2 + $0x138] sm:$0xff]  ;;  %p3197_p13 = scmp.ne.s32.totalorder %s3178_s19, 0 }
  0x76   : > { %v847_v28 = vld [vmem:[%s3153_s2 + $0x48] sm:$0xff]  ;;  %v846_v32 = vld [vmem:[%s3153_s2 + $0x40] sm:$0xff]  ;;  %v845_v36 = vld [vmem:[%s3153_s2 + $0x38] sm:$0xff] }
  0x77   : > { %v892_v37 = vld [vmem:[%s3153_s2 + $0x1b0] sm:$0xff]  ;;  %v891_v41 = vld [vmem:[%s3153_s2 + $0x1a8] sm:$0xff]  ;;  %v890_v45 = vld [vmem:[%s3153_s2 + $0x1a0] sm:$0xff] }
  0x78   : > { %v860_v38 = vld [vmem:[%s3153_s2 + $0xb0] sm:$0xff]  ;;  %v859_v42 = vld [vmem:[%s3153_s2 + $0xa8] sm:$0xff]  ;;  %v858_v46 = vld [vmem:[%s3153_s2 + $0xa0] sm:$0xff] }
  0x79   : > { %1043 = vperm.xlu1 %2169, %v884_v7   ;;  %947 = vperm.xlu0 %2168, %v852_v8   ;;  %v876_v39 = vld [vmem:[%s3153_s2 + $0x130] sm:$0xff]  ;;  %v875_v43 = vld [vmem:[%s3153_s2 + $0x128] sm:$0xff]  ;;  %v874_v47 = vld [vmem:[%s3153_s2 + $0x120] sm:$0xff] }
  0x7a   : > { %v844_v40 = vld [vmem:[%s3153_s2 + $0x30] sm:$0xff]  ;;  %v843_v44 = vld [vmem:[%s3153_s2 + $0x28] sm:$0xff]  ;;  %v842_v48 = vld [vmem:[%s3153_s2 + $0x20] sm:$0xff] }
  0x7b   : > { %v889_v49 = vld [vmem:[%s3153_s2 + $0x198] sm:$0xff]  ;;  %v2743_v54 = vld [vmem:[%s2734_s17] sm:$0xff]  ;;  %v2746_v55 = vld [vmem:[%s2734_s17 + $0x10] sm:$0xff] }
  0x7c   : > { %v857_v50 = vld [vmem:[%s3153_s2 + $0x98] sm:$0xff]  ;;  %v2749_v56 = vld [vmem:[%s2734_s17 + $0x20] sm:$0xff]  ;;  %v2752_v57 = vld [vmem:[%s2734_s17 + $0x30] sm:$0xff]  ;;  %v486_v60 = vunpack.c.h.bf16 %v2743_v54  ;;  %v490_v61 = vunpack.c.h.bf16 %v2746_v55 }
  0x7d   : > { %1088 = vperm.xlu1 %2169, %v899_v9   ;;  %992 = vperm.xlu0 %2168, %v867_v10   ;;  %v873_v52 = vld [vmem:[%s3153_s2 + $0x118] sm:$0xff]  ;;  %v2755_v58 = vld [vmem:[%s2734_s17 + $0x40] sm:$0xff]  ;;  %v2758_v59 = vld [vmem:[%s2734_s17 + $0x50] sm:$0xff]  ;;  %v494_v62 = vunpack.c.h.bf16 %v2749_v56  ;;  %v498_v3 = vunpack.c.h.bf16 %v2752_v57 }
  0x7e   : > { %v841_v53 = vld [vmem:[%s3153_s2 + $0x18] sm:$0xff]  ;;  %v446_v0 = vld [vmem:[#allocation3 + $0x8] sm:$0xff]  ;;  %v2766_v2 = vld [vmem:[%s2734_s17 + $0x60] sm:$0xff]  ;;  %v502_v4 = vunpack.c.h.bf16 %v2755_v58  ;;  %v506_v5 = vunpack.c.h.bf16 %v2758_v59 }
  0x7f   : > { %v450_v1 = vld [vmem:[#allocation3 + $0x28] sm:$0xff]  ;;  %v2772_v6 = vld [vmem:[%s2734_s17 + $0x70] sm:$0xff]  ;;  %v2775_v7 = vld [vmem:[%s2734_s17 + $0x80] sm:$0xff]  ;;  %v510_v9 = vunpack.c.h.bf16 %v2766_v2  ;;  %v550_v10 = vmul.f32 %v486_v60, %v446_v0 }
  0x80   : > { %v2778_v8 = vld [vmem:[%s2734_s17 + $0x90] sm:$0xff] }
  0x81   : > { %1040 = vperm.xlu1 %2169, %v883_v11   ;;  %944 = vperm.xlu0 %2168, %v851_v12   ;;  %v554_v11 = vmul.f32 %v490_v61, %v450_v1  ;;  %v558_v12 = vmul.f32 %v494_v62, %v446_v0 }
  0x85   : > { %1085 = vperm.xlu1 %2169, %v898_v13   ;;  %989 = vperm.xlu0 %2168, %v866_v14   ;;  %v888_v13 = vld [vmem:[%s3153_s2 + $0x190] sm:$0xff]  ;;  %v2785_v14 = vld [vmem:[%s2734_s17 + $0xa0] sm:$0xff] }
  0x89   : > { %1037 = vperm.xlu1 %2169, %v882_v15   ;;  %941 = vperm.xlu0 %2168, %v850_v16   ;;  %v2788_v15 = vld [vmem:[%s2734_s17 + $0xb0] sm:$0xff]  ;;  %v514_v16 = vunpack.c.h.bf16 %v2772_v6 }
  0x8d   : > { %1082 = vperm.xlu1 %2169, %v897_v17   ;;  %986 = vperm.xlu0 %2168, %v865_v18   ;;  %v518_v17 = vunpack.c.h.bf16 %v2775_v7  ;;  %v522_v18 = vunpack.c.h.bf16 %v2778_v8 }
  0x91   : > { %1034 = vperm.xlu1 %2169, %v881_v19   ;;  %938 = vperm.xlu0 %2168, %v849_v20   ;;  %v562_v19 = vmul.f32 %v498_v3, %v450_v1  ;;  %v856_v20 = vld [vmem:[%s3153_s2 + $0x90] sm:$0xff] }
  0x95   : > { %1079 = vperm.xlu1 %2169, %v896_v21   ;;  %983 = vperm.xlu0 %2168, %v864_v22   ;;  %v2797_v21 = vld [vmem:[%s2734_s17 + $0xc0] sm:$0xff]  ;;  %v2800_v22 = vld [vmem:[%s2734_s17 + $0xd0] sm:$0xff] }
  0x99   : > { %1031 = vperm.xlu1 %2169, %v880_v23   ;;  %935 = vperm.xlu0 %2168, %v848_v24   ;;  %v526_v23 = vunpack.c.h.bf16 %v2785_v14  ;;  %v530_v24 = vunpack.c.h.bf16 %v2788_v15 }
  0x9d   : > { %1076 = vperm.xlu1 %2169, %v895_v25   ;;  %980 = vperm.xlu0 %2168, %v863_v26   ;;  %v566_v25 = vmul.f32 %v502_v4, %v446_v0  ;;  %v570_v26 = vmul.f32 %v506_v5, %v450_v1 }
  0xa1   : > { %1028 = vperm.xlu1 %2169, %v879_v27   ;;  %932 = vperm.xlu0 %2168, %v847_v28   ;;  %v2805_v27 = vld [vmem:[%s2734_s17 + $0xe0] sm:$0xff]  ;;  %v2808_v28 = vld [vmem:[%s2734_s17 + $0xf0] sm:$0xff] }
  0xa5   : > { %1073 = vperm.xlu1 %2169, %v894_v29   ;;  %977 = vperm.xlu0 %2168, %v862_v30   ;;  %v534_v29 = vunpack.c.h.bf16 %v2797_v21  ;;  %v538_v30 = vunpack.c.h.bf16 %v2800_v22 }
  0xa9   : > { %1025 = vperm.xlu1 %2169, %v878_v31   ;;  %929 = vperm.xlu0 %2168, %v846_v32   ;;  %v574_v31 = vmul.f32 %v510_v9, %v446_v0  ;;  %v578_v32 = vmul.f32 %v514_v16, %v450_v1 }
  0xad   : > { %1070 = vperm.xlu1 %2169, %v893_v33   ;;  %974 = vperm.xlu0 %2168, %v861_v34   ;;  %v2813_v33 = vld [vmem:[%s2734_s17 + $0x8] sm:$0xff]  ;;  %v542_v34 = vunpack.c.h.bf16 %v2805_v27 }
  0xb1   : > { %1022 = vperm.xlu1 %2169, %v877_v35   ;;  %926 = vperm.xlu0 %2168, %v845_v36   ;;  %v546_v35 = vunpack.c.h.bf16 %v2808_v28  ;;  %v582_v36 = vmul.f32 %v518_v17, %v446_v0 }
  0xb5   : > { %1067 = vperm.xlu1 %2169, %v892_v37   ;;  %971 = vperm.xlu0 %2168, %v860_v38   ;;  %v586_v37 = vmul.f32 %v522_v18, %v450_v1  ;;  %v590_v38 = vmul.f32 %v526_v23, %v446_v0 }
  0xb7   : > { %v732_v51 = vadd.f32 %v586_v37, %v582_v36  ;;  %v871_v36 = vld [vmem:[%s3153_s2 + $0x108] sm:$0xff] }
  0xb8   : > { %v839_v37 = vld [vmem:[%s3153_s2 + $0x8] sm:$0xff] }
  0xb9   : > { %1019 = vperm.xlu1 %2169, %v876_v39   ;;  %923 = vperm.xlu0 %2168, %v844_v40   ;;  %v594_v39 = vmul.f32 %v530_v24, %v450_v1  ;;  %v598_v40 = vmul.f32 %v534_v29, %v446_v0  ;;  %v733_v3 = vrot.slane %v732_v51, 4 }
  0xbb   : > { %v734_v18 = vadd.f32 %v733_v3, %v732_v51  ;;  %v886_v51 = vld [vmem:[%s3153_s2 + $0x180] sm:$0xff] }
  0xbd   : > { %1064 = vperm.xlu1 %2169, %v891_v41   ;;  %968 = vperm.xlu0 %2168, %v859_v42   ;;  %v602_v41 = vmul.f32 %v538_v30, %v450_v1  ;;  %v606_v42 = vmul.f32 %v542_v34, %v446_v0  ;;  %v735_v30 = vrot.slane %v734_v18, 2 }
  0xbf   : > { %v788_v60 = vadd.f32 %v602_v41, %v598_v40  ;;  %v736_v41 = vadd.f32 %v735_v30, %v734_v18  ;;  %v2858_v18 = vld [vmem:[%s2734_s17 + $0x68] sm:$0xff]  ;;  %v838_v30 = vld [vmem:[%s3153_s2] sm:$0xff] }
  0xc1   : > { %1016 = vperm.xlu1 %2169, %v875_v43   ;;  %920 = vperm.xlu0 %2168, %v843_v44   ;;  %v610_v43 = vmul.f32 %v546_v35, %v450_v1  ;;  %v620_v44 = vadd.f32 %v554_v11, %v550_v10  ;;  %v789_v9 = vrot.slane %v788_v60, 4  ;;  %v887_v11 = vld [vmem:[%s3153_s2 + $0x188] sm:$0xff] }
  0xc3   : > { %v816_v61 = vadd.f32 %v610_v43, %v606_v42  ;;  %v790_v23 = vadd.f32 %v789_v9, %v788_v60  ;;  %v2846_v9 = vld [vmem:[%s2734_s17 + $0x28] sm:$0xff] }
  0xc5   : > { %1061 = vperm.xlu1 %2169, %v890_v45   ;;  %965 = vperm.xlu0 %2168, %v858_v46   ;;  %v488_v45 = vunpack.c.h.bf16 %v2813_v33  ;;  %v872_v46 = vld [vmem:[%s3153_s2 + $0x110] sm:$0xff]  ;;  %v817_v10 = vrot.slane %v816_v61, 4  ;;  %v791_v34 = vrot.slane %v790_v23, 2 }
  0xc7   : > { %v818_v24 = vadd.f32 %v817_v10, %v816_v61 }
  0xc9   : > { %1013 = vperm.xlu1 %2169, %v874_v47   ;;  %917 = vperm.xlu0 %2168, %v842_v48   ;;  %v840_v47 = vld [vmem:[%s3153_s2 + $0x10] sm:$0xff]  ;;  %v648_v48 = vadd.f32 %v562_v19, %v558_v12  ;;  %v855_v12 = vld [vmem:[%s3153_s2 + $0x88] sm:$0xff]  ;;  %v819_v35 = vrot.slane %v818_v24, 2 }
  0xcb   : > { %v649_v62 = vrot.slane %v648_v48, 4 }
  0xcd   : > { %1058 = vperm.xlu1 %2169, %v889_v49   ;;  %962 = vperm.xlu0 %2168, %v857_v50   ;;  %v676_v49 = vadd.f32 %v570_v26, %v566_v25  ;;  %v704_v50 = vadd.f32 %v578_v32, %v574_v31 }
  0xcf   : > { %v677_v0 = vrot.slane %v676_v49, 4  ;;  %v705_v1 = vrot.slane %v704_v50, 4 }
  0xd1   : > { %1010 = vperm.xlu1 %2169, %v873_v52   ;;  %914 = vperm.xlu0 %2168, %v841_v53   ;;  %v621_v52 = vrot.slane %v620_v44, 4  ;;  %v760_v53 = vadd.f32 %v594_v39, %v590_v38  ;;  %v678_v16 = vadd.f32 %v677_v0, %v676_v49  ;;  %v706_v17 = vadd.f32 %v705_v1, %v704_v50 }
  0xd2   : > { %v737_v50 = vrot.slane %v736_v41, 1 }
  0xd3   : > { %v622_v4 = vadd.f32 %v621_v52, %v620_v44  ;;  %v761_v5 = vrot.slane %v760_v53, 4  ;;  %v679_v26 = vrot.slane %v678_v16, 2  ;;  %v707_v29 = vrot.slane %v706_v17, 2 }
  0xd4   : > { %v792_v44 = vadd.f32 %v791_v34, %v790_v23  ;;  %v2865_v23 = vld [vmem:[%s2734_s17 + $0x88] sm:$0xff]  ;;  %v496_v34 = vunpack.c.h.bf16 %v2846_v9 }
  0xd5   : > { %1055 = vperm.xlu1 %2169, %v888_v13   ;;  %959 = vperm.xlu0 %2168, %v856_v20   ;;  %v650_v13 = vadd.f32 %v649_v62, %v648_v48  ;;  %v623_v19 = vrot.slane %v622_v4, 2  ;;  %v762_v20 = vadd.f32 %v761_v5, %v760_v53  ;;  %v680_v39 = vadd.f32 %v679_v26, %v678_v16  ;;  %v854_v62 = vld [vmem:[%s3153_s2 + $0x80] sm:$0xff]  ;;  %v2843_v5 = vld [vmem:[%s2734_s17 + $0x18] sm:$0xff]  ;;  %v2852_v16 = vld [vmem:[%s2734_s17 + $0x48] sm:$0xff] }
  0xd6   : > { %v708_v40 = vadd.f32 %v707_v29, %v706_v17  ;;  %v793_v60 = vrot.slane %v792_v44, 1  ;;  %v2855_v17 = vld [vmem:[%s2734_s17 + $0x58] sm:$0xff]  ;;  %v492_v26 = vunpack.c.h.bf16 %v2843_v5  ;;  %v870_v29 = vld [vmem:[%s3153_s2 + $0x100] sm:$0xff] }
  0xd7   : > { %v651_v25 = vrot.slane %v650_v13, 2  ;;  %v624_v31 = vadd.f32 %v623_v19, %v622_v4  ;;  %v763_v32 = vrot.slane %v762_v20, 2  ;;  %v681_v48 = vrot.slane %v680_v39, 1  ;;  %v2861_v19 = vld [vmem:[%s2734_s17 + $0x78] sm:$0xff] }
  0xd8   : > { %v709_v49 = vrot.slane %v708_v40, 1  ;;  %v738_v4 = vadd.f32 %v737_v50, %v736_v41  ;;  %v508_v41 = vunpack.c.h.bf16 %v2855_v17  ;;  %v2902_v50 = vld [vmem:[%s2734_s17 + $0xf8] sm:$0xff] }
  0xd9   : > { %1007 = vperm.xlu1 %2169, %v872_v46   ;;  %911 = vperm.xlu0 %2168, %v840_v47   ;;  %v652_v38 = vadd.f32 %v651_v25, %v650_v13  ;;  %v625_v42 = vrot.slane %v624_v31, 1  ;;  %v764_v43 = vadd.f32 %v763_v32, %v762_v20  ;;  %v820_v46 = vadd.f32 %v819_v35, %v818_v24  ;;  %v2849_v13 = vld [vmem:[%s2734_s17 + $0x38] sm:$0xff]  ;;  %v2871_v25 = vld [vmem:[%s2734_s17 + $0xa8] sm:$0xff] }
  0xda   : > { %v682_v1 = vadd.f32 %v681_v48, %v680_v39  ;;  %v710_v3 = vadd.f32 %v709_v49, %v708_v40  ;;  %v2868_v24 = vld [vmem:[%s2734_s17 + $0x98] sm:$0xff]  ;;  %v500_v35 = vunpack.c.h.bf16 %v2849_v13  ;;  %v2895_v40 = vld [vmem:[%s2734_s17 + $0xe8] sm:$0xff]  ;;  %3191 = vst [vmem:[#allocation27_spill] sm:$0xff] %v2902_v50 }
  0xdb   : > { %v653_v47 = vrot.slane %v652_v38, 1  ;;  %v626_v52 = vadd.f32 %v625_v42, %v624_v31  ;;  %v765_v53 = vrot.slane %v764_v43, 1  ;;  %v821_v61 = vrot.slane %v820_v46, 1  ;;  %v2882_v32 = vld [vmem:[%s2734_s17 + $0xb8] sm:$0xff]  ;;  %3190 = vst [vmem:[#allocation26_spill] sm:$0xff] %v2895_v40 }
  0xdc   : > { %v2892_v39 = vld [vmem:[%s2734_s17 + $0xd8] sm:$0xff]  ;;  %v512_v42 = vunpack.c.h.bf16 %v2858_v18 }
  0xdd   : > { %1052 = vperm.xlu1 %2169, %v887_v11   ;;  %956 = vperm.xlu0 %2168, %v855_v12   ;;  %v654_v0 = vadd.f32 %v653_v47, %v652_v38  ;;  %v766_v10 = vadd.f32 %v765_v53, %v764_v43  ;;  %v794_v11 = vadd.f32 %v793_v60, %v792_v44  ;;  %v2889_v38 = vld [vmem:[%s2734_s17 + $0xc8] sm:$0xff]  ;;  %v516_v43 = vunpack.c.h.bf16 %v2861_v19  ;;  %v448_v48 = vld [vmem:[#allocation3 + $0x18] sm:$0xff]  ;;  %s1673_s17 = scalar_lea.hbm %s3160_s9, %s1893_s16 }
  0xde   : > { %v822_v12 = vadd.f32 %v821_v61, %v820_v46  ;;  %3188 = vst [vmem:[#allocation24_spill] sm:$0xff] %v2889_v38  ;;  %3189 = vst [vmem:[#allocation25_spill] sm:$0xff] %v2892_v39  ;;  %v452_v49 = vld [vmem:[#allocation3 + $0x38] sm:$0xff]  ;;  %v528_v53 = vunpack.c.h.bf16 %v2871_v25  ;;  %v532_v61 = vunpack.c.h.bf16 %v2882_v32 }
  0xdf   : > { %v1271_v20 = vsel %vm1257_vm0, %v654_v0, %v626_v52  ;;  %v524_v52 = vunpack.c.h.bf16 %v2868_v24 }
  0xe0   : > { %v1272_v31 = vsel %vm1259_vm1, %v682_v1, %v1271_v20  ;;  %v536_v1 = vunpack.c.h.bf16 %v2889_v38 }
  0xe1   : > { %1004 = vperm.xlu1 %2169, %v871_v36   ;;  %908 = vperm.xlu0 %2168, %v839_v37   ;;  %v504_v36 = vunpack.c.h.bf16 %v2852_v16  ;;  %v1273_v37 = vsel %vm1261_vm2, %v710_v3, %v1272_v31  ;;  %v540_v3 = vunpack.c.h.bf16 %v2892_v39 }
  0xe2   : > { %v1274_v47 = vsel %vm1263_vm3, %v738_v4, %v1273_v37  ;;  %v544_v4 = vunpack.c.h.bf16 %v2895_v40  ;;  %v592_v40 = vmul.f32 %v528_v53, %v448_v48 }
  0xe3   : > { %v1275_v60 = vsel %vm1265_vm4, %v766_v10, %v1274_v47  ;;  %v552_v10 = vmul.f32 %v488_v45, %v448_v48  ;;  %v572_v47 = vmul.f32 %v508_v41, %v452_v49  ;;  %v596_v45 = vmul.f32 %v532_v61, %v452_v49 }
  0xe4   : > { %v1276_v0 = vsel %vm1267_vm5, %v794_v11, %v1275_v60  ;;  %v560_v11 = vmul.f32 %v496_v34, %v448_v48  ;;  %v576_v60 = vmul.f32 %v512_v42, %v448_v48  ;;  %v608_v34 = vmul.f32 %v544_v4, %v448_v48 }
  0xe5   : > { %1049 = vperm.xlu1 %2169, %v886_v51   ;;  %953 = vperm.xlu0 %2168, %v854_v62   ;;  %v520_v51 = vunpack.c.h.bf16 %v2865_v23  ;;  %v3169_v62 = vmov 1.0   ;;  %v1277_v20 = vsel %vm1269_vm6, %v822_v12, %v1276_v0  ;;  %v3192_v12 = vmov 1.0  }
  0xe6   : > { %1360 = vmatprep.mubr.f32.mxu0 %v1277_v20  ;;  %v604_v20 = vmul.f32 %v540_v3, %v452_v49 }
  0xe7   : > { %v584_v0 = vmul.f32 %v520_v51, %v448_v48 }
  0xe8   : > { %v999_v44 = vpop.permute.xlu0 %998  ;;  %v951_v46 = vpop.permute.xlu1 %950 }
  0xe9   : > { %vm1111_vm7 = vcmp.eq.s32.totalorder %v951_v46, %v2763_v63  ;;  %1001 = vperm.xlu1 %2169, %v870_v29   ;;  %905 = vperm.xlu0 %2168, %v838_v30   ;;  %vm1127_vm8 = vcmp.eq.s32.totalorder %v999_v44, %v2763_v63  ;;  %v548_v29 = vunpack.c.h.bf16 %v2902_v50  ;;  %v556_v30 = vmul.f32 %v492_v26, %v452_v49 }
  0xea   : > { %1897 = vmatprep.subr.msk.mxu0 %vm1127_vm8, %v3169_v62  ;;  %v564_v44 = vmul.f32 %v500_v35, %v452_v49  ;;  %v568_v46 = vmul.f32 %v504_v36, %v448_v48  ;;  %v588_v50 = vmul.f32 %v524_v52, %v452_v49  ;;  %v600_v26 = vmul.f32 %v536_v1, %v448_v48 }
  0xeb   : > { %1898 = vmatpush3.msk.msra.mxu0 %vm1111_vm7, %v3169_v62  ;;  %v580_v62 = vmul.f32 %v516_v43, %v452_v49  ;;  %v612_v35 = vmul.f32 %v548_v29, %v452_v49  ;;  %v634_v39 = vadd.f32 %v556_v30, %v552_v10  ;;  %v774_v43 = vadd.f32 %v596_v45, %v592_v40 }
  0xec   : > { %v1095_v31 = vpop.permute.xlu0 %1094  ;;  %v1047_v37 = vpop.permute.xlu1 %1046  ;;  %v690_v38 = vadd.f32 %v572_v47, %v568_v46  ;;  %v746_v42 = vadd.f32 %v588_v50, %v584_v0  ;;  %v802_v1 = vadd.f32 %v604_v20, %v600_v26 }
  0xed   : > { %vm1143_vm9 = vcmp.eq.s32.totalorder %v1047_v37, %v2763_v63  ;;  %vm1159_vm10 = vcmp.eq.s32.totalorder %v1095_v31, %v2763_v63  ;;  %v662_v37 = vadd.f32 %v564_v44, %v560_v11  ;;  %v718_v31 = vadd.f32 %v580_v62, %v576_v60 }
  0xee   : > { %1932 = vmatprep.subr.msk.mxu1 %vm1159_vm10, %v3192_v12  ;;  %v635_v51 = vrot.slane %v634_v39, 4  ;;  %v691_v48 = vrot.slane %v690_v38, 4  ;;  %v747_v53 = vrot.slane %v746_v42, 4  ;;  %v775_v61 = vrot.slane %v774_v43, 4 }
  0xef   : > { %1933 = vmatpush3.msk.msra.mxu1 %vm1143_vm9, %v3192_v12  ;;  %v663_v52 = vrot.slane %v662_v37, 4  ;;  %v719_v49 = vrot.slane %v718_v31, 4  ;;  %v830_v3 = vadd.f32 %v612_v35, %v608_v34 }
  0xf0   : > { %v996_v36 = vpop.permute.xlu0 %995  ;;  %v1092_v41 = vpop.permute.xlu1 %1091  ;;  %v636_v29 = vadd.f32 %v635_v51, %v634_v39  ;;  %v692_v30 = vadd.f32 %v691_v48, %v690_v38  ;;  %v748_v40 = vadd.f32 %v747_v53, %v746_v42  ;;  %v776_v50 = vadd.f32 %v775_v61, %v774_v43 }
  0xf1   : > { %vm1126_vm11 = vcmp.eq.s32.totalorder %v996_v36, %v2763_v63  ;;  %vm1158_vm12 = vcmp.eq.s32.totalorder %v1092_v41, %v2763_v63  ;;  %v664_v10 = vadd.f32 %v663_v52, %v662_v37  ;;  %v720_v11 = vadd.f32 %v719_v49, %v718_v31 }
  0xf2   : > { %1899 = vmatprep.subr.msk.mxu0 %vm1126_vm11, %v3192_v12  ;;  %1934 = vmatprep.subr.msk.mxu1 %vm1158_vm12, %v3192_v12  ;;  %v637_v44 = vrot.slane %v636_v29, 2  ;;  %v693_v47 = vrot.slane %v692_v30, 2  ;;  %v749_v0 = vrot.slane %v748_v40, 2  ;;  %v777_v45 = vrot.slane %v776_v50, 2 }
  0xf3   : > { %v665_v46 = vrot.slane %v664_v10, 2  ;;  %v721_v60 = vrot.slane %v720_v11, 2  ;;  %v803_v39 = vrot.slane %v802_v1, 4  ;;  %v831_v26 = vrot.slane %v830_v3, 4 }
  0xf4   : > { %v1044_v4 = vpop.permute.xlu1 %1043  ;;  %v948_v62 = vpop.permute.xlu0 %947  ;;  %v638_v34 = vadd.f32 %v637_v44, %v636_v29  ;;  %v694_v36 = vadd.f32 %v693_v47, %v692_v30  ;;  %v750_v37 = vadd.f32 %v749_v0, %v748_v40  ;;  %v778_v31 = vadd.f32 %v777_v45, %v776_v50 }
  0xf5   : > { %vm1142_vm13 = vcmp.eq.s32.totalorder %v1044_v4, %v2763_v63  ;;  %vm1110_vm14 = vcmp.eq.s32.totalorder %v948_v62, %v2763_v63  ;;  %v666_v35 = vadd.f32 %v665_v46, %v664_v10  ;;  %v722_v41 = vadd.f32 %v721_v60, %v720_v11 }
  0xf6   : > { %1900 = vmatpush3.msk.msra.mxu0 %vm1110_vm14, %v3192_v12  ;;  %1935 = vmatpush3.msk.msra.mxu1 %vm1142_vm13, %v3192_v12  ;;  %v639_v42 = vrot.slane %v638_v34, 1  ;;  %v695_v51 = vrot.slane %v694_v36, 1  ;;  %v751_v48 = vrot.slane %v750_v37, 1  ;;  %v779_v49 = vrot.slane %v778_v31, 1 }
  0xf7   : > { %v667_v43 = vrot.slane %v666_v35, 1  ;;  %v723_v52 = vrot.slane %v722_v41, 1  ;;  %v804_v53 = vadd.f32 %v803_v39, %v802_v1  ;;  %v832_v61 = vadd.f32 %v831_v26, %v830_v3 }
  0xf8   : > { %v1089_v38 = vpop.permute.xlu1 %1088  ;;  %v993_v20 = vpop.permute.xlu0 %992  ;;  %v640_v29 = vadd.f32 %v639_v42, %v638_v34  ;;  %v696_v30 = vadd.f32 %v695_v51, %v694_v36  ;;  %v752_v40 = vadd.f32 %v751_v48, %v750_v37  ;;  %v485_v50 = vunpack.c.l.bf16 %v2743_v54  ;;  %v445_v37 = vld [vmem:[#allocation3] sm:$0xff] }
  0xf9   : > { %vm1157_vm15 = vcmp.eq.s32.totalorder %v1089_v38, %v2763_v63  ;;  %vm1125_vm7 = vcmp.eq.s32.totalorder %v993_v20, %v2763_v63  ;;  %v668_v10 = vadd.f32 %v667_v43, %v666_v35  ;;  %v724_v11 = vadd.f32 %v723_v52, %v722_v41 }
  0xfa   : > { %1901 = vmatprep.subr.msk.mxu0 %vm1125_vm7, %v3192_v12  ;;  %1936 = vmatprep.subr.msk.mxu1 %vm1157_vm15, %v3192_v12  ;;  %v780_v44 = vadd.f32 %v779_v49, %v778_v31  ;;  %v805_v1 = vrot.slane %v804_v53, 2  ;;  %v833_v3 = vrot.slane %v832_v61, 2  ;;  %v489_v60 = vunpack.c.l.bf16 %v2746_v55 }
  0xfb   : > { %v1285_v46 = vsel %vm1257_vm0, %v668_v10, %v640_v29  ;;  %v493_v0 = vunpack.c.l.bf16 %v2749_v56  ;;  %v497_v45 = vunpack.c.l.bf16 %v2752_v57  ;;  %v501_v34 = vunpack.c.l.bf16 %v2755_v58  ;;  %v449_v58 = vld [vmem:[#allocation3 + $0x20] sm:$0xff] }
  0xfc   : > { %v1041_v4 = vpop.permute.xlu1 %1040  ;;  %v945_v62 = vpop.permute.xlu0 %944  ;;  %v1286_v47 = vsel %vm1259_vm1, %v696_v30, %v1285_v46  ;;  %v806_v54 = vadd.f32 %v805_v1, %v804_v53  ;;  %v834_v38 = vadd.f32 %v833_v3, %v832_v61  ;;  %v505_v55 = vunpack.c.l.bf16 %v2758_v59 }
  0xfd   : > { %vm1141_vm8 = vcmp.eq.s32.totalorder %v1041_v4, %v2763_v63  ;;  %vm1109_vm9 = vcmp.eq.s32.totalorder %v945_v62, %v2763_v63  ;;  %v1287_v20 = vsel %vm1261_vm2, %v724_v11, %v1286_v47  ;;  %v509_v41 = vunpack.c.l.bf16 %v2766_v2 }
  0xfe   : > { %1902 = vmatpush3.msk.msra.mxu0 %vm1109_vm9, %v3192_v12  ;;  %1937 = vmatpush3.msk.msra.mxu1 %vm1141_vm8, %v3192_v12  ;;  %v1288_v35 = vsel %vm1263_vm3, %v752_v40, %v1287_v20  ;;  %v807_v56 = vrot.slane %v806_v54, 1  ;;  %v835_v57 = vrot.slane %v834_v38, 1  ;;  %v513_v31 = vunpack.c.l.bf16 %v2772_v6 }
  0xff   : > { %v1289_v36 = vsel %vm1265_vm4, %v780_v44, %v1288_v35  ;;  %v517_v42 = vunpack.c.l.bf16 %v2775_v7  ;;  %v521_v43 = vunpack.c.l.bf16 %v2778_v8  ;;  %v525_v59 = vunpack.c.l.bf16 %v2785_v14 }
 0x100   : > { %v1086_v39 = vpop.permute.xlu1 %1085  ;;  %v990_v26 = vpop.permute.xlu0 %989  ;;  %v808_v48 = vadd.f32 %v807_v56, %v806_v54  ;;  %v836_v49 = vadd.f32 %v835_v57, %v834_v38  ;;  %v529_v53 = vunpack.c.l.bf16 %v2788_v15  ;;  %v533_v61 = vunpack.c.l.bf16 %v2797_v21 }
 0x101   : > { %vm1156_vm10 = vcmp.eq.s32.totalorder %v1086_v39, %v2763_v63  ;;  %vm1124_vm11 = vcmp.eq.s32.totalorder %v990_v26, %v2763_v63  ;;  %v537_v2 = vunpack.c.l.bf16 %v2800_v22  ;;  %v541_v6 = vunpack.c.l.bf16 %v2805_v27 }
 0x102   : > { %1903 = vmatprep.subr.msk.mxu0 %vm1124_vm11, %v3192_v12  ;;  %1938 = vmatprep.subr.msk.mxu1 %vm1156_vm10, %v3192_v12  ;;  %v1290_v7 = vsel %vm1267_vm5, %v808_v48, %v1289_v36  ;;  %v545_v8 = vunpack.c.l.bf16 %v2808_v28  ;;  %v549_v14 = vmul.f32 %v485_v50, %v445_v37  ;;  %v553_v15 = vmul.f32 %v489_v60, %v449_v58 }
 0x103   : > { %v1291_v21 = vsel %vm1269_vm6, %v836_v49, %v1290_v7  ;;  %v557_v4 = vmul.f32 %v493_v0, %v445_v37  ;;  %v561_v62 = vmul.f32 %v497_v45, %v449_v58  ;;  %v565_v29 = vmul.f32 %v501_v34, %v445_v37 }
 0x104   : > { %v1038_v51 = vpop.permute.xlu1 %1037  ;;  %v942_v52 = vpop.permute.xlu0 %941  ;;  %1430 = vmatprep.mubr.f32.mxu1 %v1291_v21  ;;  %v569_v22 = vmul.f32 %v505_v55, %v449_v58  ;;  %v573_v27 = vmul.f32 %v509_v41, %v445_v37  ;;  %v577_v11 = vmul.f32 %v513_v31, %v449_v58  ;;  %v581_v40 = vmul.f32 %v517_v42, %v445_v37 }
 0x105   : > { %vm1140_vm12 = vcmp.eq.s32.totalorder %v1038_v51, %v2763_v63  ;;  %vm1108_vm13 = vcmp.eq.s32.totalorder %v942_v52, %v2763_v63  ;;  %v585_v44 = vmul.f32 %v521_v43, %v449_v58  ;;  %v589_v28 = vmul.f32 %v525_v59, %v445_v37 }
 0x106   : > { %1904 = vmatpush3.msk.msra.mxu0 %vm1108_vm13, %v3192_v12  ;;  %1939 = vmatpush3.msk.msra.mxu1 %vm1140_vm12, %v3192_v12  ;;  %v593_v50 = vmul.f32 %v529_v53, %v449_v58  ;;  %v597_v1 = vmul.f32 %v533_v61, %v445_v37  ;;  %v601_v3 = vmul.f32 %v537_v2, %v449_v58  ;;  %v487_v46 = vunpack.c.l.bf16 %v2813_v33 }
 0x107   : > { %v605_v47 = vmul.f32 %v541_v6, %v445_v37  ;;  %v609_v60 = vmul.f32 %v545_v8, %v449_v58  ;;  %v613_v0 = vadd.f32 %v553_v15, %v549_v14  ;;  %v641_v45 = vadd.f32 %v561_v62, %v557_v4 }
 0x108   : > { %v1083_v10 = vpop.permute.xlu1 %1082  ;;  %v987_v30 = vpop.permute.xlu0 %986  ;;  %v669_v54 = vadd.f32 %v569_v22, %v565_v29  ;;  %v697_v38 = vadd.f32 %v577_v11, %v573_v27  ;;  %v725_v20 = vadd.f32 %v585_v44, %v581_v40  ;;  %v753_v34 = vadd.f32 %v593_v50, %v589_v28 }
 0x109   : > { %vm1155_vm14 = vcmp.eq.s32.totalorder %v1083_v10, %v2763_v63  ;;  %vm1123_vm15 = vcmp.eq.s32.totalorder %v987_v30, %v2763_v63  ;;  %v614_v35 = vrot.slane %v613_v0, 4  ;;  %v642_v55 = vrot.slane %v641_v45, 4 }
 0x10a   : > { %1905 = vmatprep.subr.msk.mxu0 %vm1123_vm15, %v3192_v12  ;;  %1940 = vmatprep.subr.msk.mxu1 %vm1155_vm14, %v3192_v12  ;;  %v670_v56 = vrot.slane %v669_v54, 4  ;;  %v698_v57 = vrot.slane %v697_v38, 4  ;;  %v726_v36 = vrot.slane %v725_v20, 4  ;;  %v754_v41 = vrot.slane %v753_v34, 4 }
 0x10b   : > { %v615_v37 = vadd.f32 %v614_v35, %v613_v0  ;;  %v643_v58 = vadd.f32 %v642_v55, %v641_v45  ;;  %v781_v31 = vadd.f32 %v601_v3, %v597_v1  ;;  %v809_v42 = vadd.f32 %v609_v60, %v605_v47 }
 0x10c   : > { %v1035_v39 = vpop.permute.xlu1 %1034  ;;  %v939_v26 = vpop.permute.xlu0 %938  ;;  %v671_v51 = vadd.f32 %v670_v56, %v669_v54  ;;  %v699_v52 = vadd.f32 %v698_v57, %v697_v38  ;;  %v727_v48 = vadd.f32 %v726_v36, %v725_v20  ;;  %v755_v49 = vadd.f32 %v754_v41, %v753_v34 }
 0x10d   : > { %vm1139_vm7 = vcmp.eq.s32.totalorder %v1035_v39, %v2763_v63  ;;  %vm1107_vm8 = vcmp.eq.s32.totalorder %v939_v26, %v2763_v63  ;;  %v616_v53 = vrot.slane %v615_v37, 2  ;;  %v644_v61 = vrot.slane %v643_v58, 2 }
 0x10e   : > { %1906 = vmatpush3.msk.msra.mxu0 %vm1107_vm8, %v3192_v12  ;;  %1941 = vmatpush3.msk.msra.mxu1 %vm1139_vm7, %v3192_v12  ;;  %v672_v2 = vrot.slane %v671_v51, 2  ;;  %v700_v6 = vrot.slane %v699_v52, 2  ;;  %v728_v7 = vrot.slane %v727_v48, 2  ;;  %v756_v8 = vrot.slane %v755_v49, 2 }
 0x10f   : > { %v617_v14 = vadd.f32 %v616_v53, %v615_v37  ;;  %v645_v15 = vadd.f32 %v644_v61, %v643_v58  ;;  %v782_v21 = vrot.slane %v781_v31, 4  ;;  %v810_v4 = vrot.slane %v809_v42, 4 }
 0x110   : > { %v1080_v43 = vpop.permute.xlu1 %1079  ;;  %v984_v59 = vpop.permute.xlu0 %983  ;;  %v673_v10 = vadd.f32 %v672_v2, %v671_v51  ;;  %v701_v30 = vadd.f32 %v700_v6, %v699_v52  ;;  %v729_v22 = vadd.f32 %v728_v7, %v727_v48  ;;  %v757_v27 = vadd.f32 %v756_v8, %v755_v49  ;;  %v447_v48 = vld [vmem:[#allocation3 + $0x10] sm:$0xff] }
 0x111   : > { %vm1154_vm9 = vcmp.eq.s32.totalorder %v1080_v43, %v2763_v63  ;;  %vm1122_vm10 = vcmp.eq.s32.totalorder %v984_v59, %v2763_v63  ;;  %v618_v11 = vrot.slane %v617_v14, 1  ;;  %v646_v40 = vrot.slane %v645_v15, 1  ;;  %v451_v49 = vld [vmem:[#allocation3 + $0x30] sm:$0xff] }
 0x112   : > { %1907 = vmatprep.subr.msk.mxu0 %vm1122_vm10, %v3192_v12  ;;  %1942 = vmatprep.subr.msk.mxu1 %vm1154_vm9, %v3192_v12  ;;  %v674_v44 = vrot.slane %v673_v10, 1  ;;  %v702_v28 = vrot.slane %v701_v30, 1  ;;  %v730_v50 = vrot.slane %v729_v22, 1  ;;  %v758_v1 = vrot.slane %v757_v27, 1 }
 0x113   : > { %v619_v3 = vadd.f32 %v618_v11, %v617_v14  ;;  %v647_v47 = vadd.f32 %v646_v40, %v645_v15  ;;  %v783_v60 = vadd.f32 %v782_v21, %v781_v31  ;;  %v811_v0 = vadd.f32 %v810_v4, %v809_v42  ;;  %v3193_v14 = vld [vmem:[#allocation24_spill] sm:$0xff]  ;;  %v3194_v21 = vld [vmem:[#allocation25_spill] sm:$0xff] }
 0x114   : > { %v1032_v62 = vpop.permute.xlu1 %1031  ;;  %v936_v29 = vpop.permute.xlu0 %935  ;;  %v675_v26 = vadd.f32 %v674_v44, %v673_v10  ;;  %v703_v54 = vadd.f32 %v702_v28, %v701_v30  ;;  %v731_v38 = vadd.f32 %v730_v50, %v729_v22  ;;  %v491_v20 = vunpack.c.l.bf16 %v2843_v5  ;;  %v3196_v10 = vld [vmem:[#allocation27_spill] sm:$0xff] }
 0x115   : > { %vm1138_vm11 = vcmp.eq.s32.totalorder %v1032_v62, %v2763_v63  ;;  %vm1106_vm12 = vcmp.eq.s32.totalorder %v936_v29, %v2763_v63  ;;  %v784_v34 = vrot.slane %v783_v60, 2  ;;  %v812_v35 = vrot.slane %v811_v0, 2  ;;  %v3195_v62 = vld [vmem:[#allocation26_spill] sm:$0xff] }
 0x116   : > { %1908 = vmatpush3.msk.msra.mxu0 %vm1106_vm12, %v3192_v12  ;;  %1943 = vmatpush3.msk.msra.mxu1 %vm1138_vm11, %v3192_v12  ;;  %v759_v55 = vadd.f32 %v758_v1, %v757_v27  ;;  %v1258_v56 = vsel %vm1257_vm0, %v647_v47, %v619_v3  ;;  %v495_v57 = vunpack.c.l.bf16 %v2846_v9  ;;  %v499_v36 = vunpack.c.l.bf16 %v2849_v13 }
 0x117   : > { %v785_v41 = vadd.f32 %v784_v34, %v783_v60  ;;  %v813_v37 = vadd.f32 %v812_v35, %v811_v0  ;;  %v1260_v5 = vsel %vm1259_vm1, %v675_v26, %v1258_v56  ;;  %v503_v58 = vunpack.c.l.bf16 %v2852_v16 }
 0x118   : > { %v1077_v45 = vpop.permute.xlu1 %1076  ;;  %v981_v39 = vpop.permute.xlu0 %980  ;;  %v1262_v43 = vsel %vm1261_vm2, %v703_v54, %v1260_v5  ;;  %v507_v59 = vunpack.c.l.bf16 %v2855_v17  ;;  %v511_v51 = vunpack.c.l.bf16 %v2858_v18  ;;  %v515_v52 = vunpack.c.l.bf16 %v2861_v19 }
 0x119   : > { %vm1153_vm13 = vcmp.eq.s32.totalorder %v1077_v45, %v2763_v63  ;;  %vm1121_vm14 = vcmp.eq.s32.totalorder %v981_v39, %v2763_v63  ;;  %v786_v9 = vrot.slane %v785_v41, 1  ;;  %v814_v13 = vrot.slane %v813_v37, 1 }
 0x11a   : > { %1909 = vmatprep.subr.msk.mxu0 %vm1121_vm14, %v3192_v12  ;;  %1944 = vmatprep.subr.msk.mxu1 %vm1153_vm13, %v3192_v12  ;;  %v1264_v16 = vsel %vm1263_vm3, %v731_v38, %v1262_v43  ;;  %v519_v17 = vunpack.c.l.bf16 %v2865_v23  ;;  %v523_v18 = vunpack.c.l.bf16 %v2868_v24  ;;  %v527_v19 = vunpack.c.l.bf16 %v2871_v25 }
 0x11b   : > { %v787_v53 = vadd.f32 %v786_v9, %v785_v41  ;;  %v815_v61 = vadd.f32 %v814_v13, %v813_v37  ;;  %v1266_v2 = vsel %vm1265_vm4, %v759_v55, %v1264_v16  ;;  %v531_v6 = vunpack.c.l.bf16 %v2882_v32 }
 0x11c   : > { %v1029_v31 = vpop.permute.xlu1 %1028  ;;  %v933_v42 = vpop.permute.xlu0 %932  ;;  %v535_v15 = vunpack.c.l.bf16 %v3193_v14  ;;  %v539_v4 = vunpack.c.l.bf16 %v3194_v21  ;;  %v543_v29 = vunpack.c.l.bf16 %v3195_v62  ;;  %v551_v23 = vmul.f32 %v487_v46, %v447_v48 }
 0x11d   : > { %vm1137_vm15 = vcmp.eq.s32.totalorder %v1029_v31, %v2763_v63  ;;  %vm1105_vm7 = vcmp.eq.s32.totalorder %v933_v42, %v2763_v63  ;;  %v1268_v24 = vsel %vm1267_vm5, %v787_v53, %v1266_v2  ;;  %v555_v25 = vmul.f32 %v491_v20, %v451_v49 }
 0x11e   : > { %1910 = vmatpush3.msk.msra.mxu0 %vm1105_vm7, %v3192_v12  ;;  %1945 = vmatpush3.msk.msra.mxu1 %vm1137_vm15, %v3192_v12  ;;  %v3024_v32 = vsel %vm1269_vm6, %v815_v61, %v1268_v24  ;;  %v547_v30 = vunpack.c.l.bf16 %v3196_v10  ;;  %v559_v22 = vmul.f32 %v495_v57, %v447_v48  ;;  %v563_v27 = vmul.f32 %v499_v36, %v451_v49 }
 0x11f   : > { %v567_v33 = vmul.f32 %v503_v58, %v447_v48  ;;  %v571_v46 = vmul.f32 %v507_v59, %v451_v49  ;;  %v575_v11 = vmul.f32 %v511_v51, %v447_v48  ;;  %v579_v40 = vmul.f32 %v515_v52, %v451_v49 }
 0x120   : > { %v1074_v7 = vpop.permute.xlu1 %1073  ;;  %v978_v8 = vpop.permute.xlu0 %977  ;;  %v583_v50 = vmul.f32 %v519_v17, %v447_v48  ;;  %v587_v1 = vmul.f32 %v523_v18, %v451_v49  ;;  %v591_v3 = vmul.f32 %v527_v19, %v447_v48  ;;  %v595_v47 = vmul.f32 %v531_v6, %v451_v49 }
 0x121   : > { %vm1152_vm8 = vcmp.eq.s32.totalorder %v1074_v7, %v2763_v63  ;;  %vm1120_vm9 = vcmp.eq.s32.totalorder %v978_v8, %v2763_v63  ;;  %v599_v60 = vmul.f32 %v535_v15, %v447_v48  ;;  %v603_v0 = vmul.f32 %v539_v4, %v451_v49 }
 0x122   : > { %1911 = vmatprep.subr.msk.mxu0 %vm1120_vm9, %v3192_v12  ;;  %1946 = vmatprep.subr.msk.mxu1 %vm1152_vm8, %v3192_v12  ;;  %v607_v45 = vmul.f32 %v543_v29, %v447_v48  ;;  %v611_v39 = vmul.f32 %v547_v30, %v451_v49  ;;  %v627_v26 = vadd.f32 %v555_v25, %v551_v23 }
 0x123   : > { %v655_v54 = vadd.f32 %v563_v27, %v559_v22  ;;  %v683_v38 = vadd.f32 %v571_v46, %v567_v33  ;;  %v711_v20 = vadd.f32 %v579_v40, %v575_v11  ;;  %v739_v34 = vadd.f32 %v587_v1, %v583_v50 }
 0x124   : > { %v1026_v44 = vpop.permute.xlu1 %1025  ;;  %v930_v28 = vpop.permute.xlu0 %929  ;;  %v628_v56 = vrot.slane %v627_v26, 4  ;;  %v767_v57 = vadd.f32 %v595_v47, %v591_v3  ;;  %v795_v36 = vadd.f32 %v603_v0, %v599_v60  ;;  %v823_v41 = vadd.f32 %v611_v39, %v607_v45 }
 0x125   : > { %vm1136_vm10 = vcmp.eq.s32.totalorder %v1026_v44, %v2763_v63  ;;  %vm1104_vm11 = vcmp.eq.s32.totalorder %v930_v28, %v2763_v63  ;;  %v656_v37 = vrot.slane %v655_v54, 4  ;;  %v684_v5 = vrot.slane %v683_v38, 4 }
 0x126   : > { %1912 = vmatpush3.msk.msra.mxu0 %vm1104_vm11, %v3192_v12  ;;  %1947 = vmatpush3.msk.msra.mxu1 %vm1136_vm10, %v3192_v12  ;;  %v629_v58 = vadd.f32 %v628_v56, %v627_v26  ;;  %v712_v31 = vrot.slane %v711_v20, 4  ;;  %v740_v42 = vrot.slane %v739_v34, 4  ;;  %v768_v43 = vrot.slane %v767_v57, 4 }
 0x127   : > { %v657_v59 = vadd.f32 %v656_v37, %v655_v54  ;;  %v685_v51 = vadd.f32 %v684_v5, %v683_v38  ;;  %v796_v52 = vrot.slane %v795_v36, 4  ;;  %v824_v9 = vrot.slane %v823_v41, 4 }
 0x128   : > { %v1071_v35 = vpop.permute.xlu1 %1070  ;;  %v975_v55 = vpop.permute.xlu0 %974  ;;  %v630_v16 = vrot.slane %v629_v58, 2  ;;  %v713_v49 = vadd.f32 %v712_v31, %v711_v20  ;;  %v741_v17 = vadd.f32 %v740_v42, %v739_v34  ;;  %v769_v18 = vadd.f32 %v768_v43, %v767_v57 }
 0x129   : > { %vm1151_vm12 = vcmp.eq.s32.totalorder %v1071_v35, %v2763_v63  ;;  %vm1119_vm13 = vcmp.eq.s32.totalorder %v975_v55, %v2763_v63  ;;  %v658_v19 = vrot.slane %v657_v59, 2  ;;  %v686_v53 = vrot.slane %v685_v51, 2 }
 0x12a   : > { %1913 = vmatprep.subr.msk.mxu0 %vm1119_vm13, %v3192_v12  ;;  %1948 = vmatprep.subr.msk.mxu1 %vm1151_vm12, %v3192_v12  ;;  %v631_v61 = vadd.f32 %v630_v16, %v629_v58  ;;  %v714_v2 = vrot.slane %v713_v49, 2  ;;  %v742_v6 = vrot.slane %v741_v17, 2  ;;  %v770_v7 = vrot.slane %v769_v18, 2 }
 0x12b   : > { %v659_v8 = vadd.f32 %v658_v19, %v657_v59  ;;  %v687_v14 = vadd.f32 %v686_v53, %v685_v51  ;;  %v797_v15 = vadd.f32 %v796_v52, %v795_v36  ;;  %v825_v21 = vadd.f32 %v824_v9, %v823_v41 }
 0x12c   : > { %v1023_v13 = vpop.permute.xlu1 %1022  ;;  %v927_v48 = vpop.permute.xlu0 %926  ;;  %v632_v29 = vrot.slane %v631_v61, 1  ;;  %v715_v23 = vadd.f32 %v714_v2, %v713_v49  ;;  %v743_v24 = vadd.f32 %v742_v6, %v741_v17  ;;  %v771_v25 = vadd.f32 %v770_v7, %v769_v18 }
 0x12d   : > { %vm1135_vm14 = vcmp.eq.s32.totalorder %v1023_v13, %v2763_v63  ;;  %vm1103_vm15 = vcmp.eq.s32.totalorder %v927_v48, %v2763_v63  ;;  %v660_v10 = vrot.slane %v659_v8, 1  ;;  %v688_v30 = vrot.slane %v687_v14, 1 }
 0x12e   : > { %1914 = vmatpush3.msk.msra.mxu0 %vm1103_vm15, %v3192_v12  ;;  %1949 = vmatpush3.msk.msra.mxu1 %vm1135_vm14, %v3192_v12  ;;  %v633_v22 = vadd.f32 %v632_v29, %v631_v61  ;;  %v716_v27 = vrot.slane %v715_v23, 1  ;;  %v744_v33 = vrot.slane %v743_v24, 1  ;;  %v772_v46 = vrot.slane %v771_v25, 1  ;;  %v1459_v29 = vld [vmem:[#allocation7 + $0x40] sm:$0xff] }
 0x12f   : > { %v661_v11 = vadd.f32 %v660_v10, %v659_v8  ;;  %v689_v40 = vadd.f32 %v688_v30, %v687_v14  ;;  %v798_v44 = vrot.slane %v797_v15, 2  ;;  %v826_v28 = vrot.slane %v825_v21, 2  ;;  %v1466_v14 = vld [vmem:[#allocation7 + $0x78] sm:$0xff]  ;;  %v1455_v10 = vld [vmem:[#allocation7 + $0x20] sm:$0xff] }
 0x130   : > { %v1068_v4 = vpop.permute.xlu1 %1067  ;;  %v972_v62 = vpop.permute.xlu0 %971  ;;  %v717_v3 = vadd.f32 %v716_v27, %v715_v23  ;;  %v745_v0 = vadd.f32 %v744_v33, %v743_v24  ;;  %v773_v39 = vadd.f32 %v772_v46, %v771_v25  ;;  %v1458_v23 = vld [vmem:[#allocation7 + $0x38] sm:$0xff]  ;;  %v1457_v24 = vld [vmem:[#allocation7 + $0x30] sm:$0xff]  ;;  %v1456_v25 = vld [vmem:[#allocation7 + $0x28] sm:$0xff] }
 0x131   : > { %vm1150_vm7 = vcmp.eq.s32.totalorder %v1068_v4, %v2763_v63  ;;  %vm1118_vm8 = vcmp.eq.s32.totalorder %v972_v62, %v2763_v63  ;;  %v799_v47 = vadd.f32 %v798_v44, %v797_v15  ;;  %v827_v60 = vadd.f32 %v826_v28, %v825_v21  ;;  %v1465_v21 = vld [vmem:[#allocation7 + $0x70] sm:$0xff]  ;;  %v1464_v4 = vld [vmem:[#allocation7 + $0x68] sm:$0xff]  ;;  %v1463_v62 = vld [vmem:[#allocation7 + $0x60] sm:$0xff] }
 0x132   : > { %1915 = vmatprep.subr.msk.mxu0 %vm1118_vm8, %v3192_v12  ;;  %1950 = vmatprep.subr.msk.mxu1 %vm1150_vm7, %v3192_v12  ;;  %v1278_v45 = vsel %vm1257_vm0, %v661_v11, %v633_v22  ;;  %v2387_v15 = vmov 0.0   ;;  %v1454_v30 = vld [vmem:[#allocation7 + $0x18] sm:$0xff]  ;;  %v1453_v22 = vld [vmem:[#allocation7 + $0x10] sm:$0xff]  ;;  %v1452_v27 = vld [vmem:[#allocation7 + $0x8] sm:$0xff] }
 0x133   : > { %v800_v26 = vrot.slane %v799_v47, 1  ;;  %v828_v54 = vrot.slane %v827_v60, 1  ;;  %v1279_v38 = vsel %vm1259_vm1, %v689_v40, %v1278_v45  ;;  %v1451_v33 = vld [vmem:[#allocation7] sm:$0xff]  ;;  %v1582_v46 = vld [vmem:[#allocation12 + $0xf8] sm:$0xff]  ;;  %v1581_v40 = vld [vmem:[#allocation12 + $0xf0] sm:$0xff] }
 0x134   : > { %v1020_v50 = vpop.permute.xlu1 %1019  ;;  %v924_v1 = vpop.permute.xlu0 %923  ;;  %v1280_v35 = vsel %vm1261_vm2, %v717_v3, %v1279_v38  ;;  %v1566_v11 = vld [vmem:[#allocation12 + $0x78] sm:$0xff]  ;;  %v1565_v44 = vld [vmem:[#allocation12 + $0x70] sm:$0xff]  ;;  %v1580_v28 = vld [vmem:[#allocation12 + $0xe8] sm:$0xff] }
 0x135   : > { %vm1134_vm9 = vcmp.eq.s32.totalorder %v1020_v50, %v2763_v63  ;;  %vm1102_vm10 = vcmp.eq.s32.totalorder %v924_v1, %v2763_v63  ;;  %v801_v55 = vadd.f32 %v800_v26, %v799_v47  ;;  %v829_v56 = vadd.f32 %v828_v54, %v827_v60  ;;  %v1564_v50 = vld [vmem:[#allocation12 + $0x68] sm:$0xff]  ;;  %v1579_v1 = vld [vmem:[#allocation12 + $0xe0] sm:$0xff]  ;;  %v1578_v47 = vld [vmem:[#allocation12 + $0xd8] sm:$0xff] }
 0x136   : > { %1916 = vmatpush3.msk.msra.mxu0 %vm1102_vm10, %v3192_v12  ;;  %1951 = vmatpush3.msk.msra.mxu1 %vm1134_vm9, %v3192_v12  ;;  %v1281_v57 = vsel %vm1263_vm3, %v745_v0, %v1280_v35  ;;  %v1563_v3 = vld [vmem:[#allocation12 + $0x60] sm:$0xff]  ;;  %v1562_v60 = vld [vmem:[#allocation12 + $0x58] sm:$0xff]  ;;  %v1577_v0 = vld [vmem:[#allocation12 + $0xd0] sm:$0xff] }
 0x137   : > { %v1282_v36 = vsel %vm1265_vm4, %v773_v39, %v1281_v57  ;;  %v1561_v45 = vld [vmem:[#allocation12 + $0x50] sm:$0xff]  ;;  %v1576_v39 = vld [vmem:[#allocation12 + $0xc8] sm:$0xff]  ;;  %v1575_v54 = vld [vmem:[#allocation12 + $0xc0] sm:$0xff] }
 0x138   : > { %v1065_v20 = vpop.permute.xlu1 %1064  ;;  %v969_v34 = vpop.permute.xlu0 %968  ;;  %v1283_v5 = vsel %vm1267_vm5, %v801_v55, %v1282_v36  ;;  %v1560_v26 = vld [vmem:[#allocation12 + $0x48] sm:$0xff]  ;;  %v1559_v38 = vld [vmem:[#allocation12 + $0x40] sm:$0xff]  ;;  %v1573_v35 = vld [vmem:[#allocation12 + $0xb0] sm:$0xff] }
 0x139   : > { %vm1149_vm11 = vcmp.eq.s32.totalorder %v1065_v20, %v2763_v63  ;;  %vm1117_vm12 = vcmp.eq.s32.totalorder %v969_v34, %v2763_v63  ;;  %v3060_v58 = vsel %vm1269_vm6, %v829_v56, %v1283_v5  ;;  %v1574_v20 = vld [vmem:[#allocation12 + $0xb8] sm:$0xff]  ;;  %v1557_v55 = vld [vmem:[#allocation12 + $0x30] sm:$0xff]  ;;  %v1572_v56 = vld [vmem:[#allocation12 + $0xa8] sm:$0xff] }
 0x13a   : > { %1917 = vmatprep.subr.msk.mxu0 %vm1117_vm12, %v3192_v12  ;;  %1952 = vmatprep.subr.msk.mxu1 %vm1149_vm11, %v3192_v12  ;;  %v1558_v34 = vld [vmem:[#allocation12 + $0x38] sm:$0xff]  ;;  %v1556_v57 = vld [vmem:[#allocation12 + $0x28] sm:$0xff]  ;;  %v1571_v36 = vld [vmem:[#allocation12 + $0xa0] sm:$0xff] }
 0x13c   : > { %v1017_v41 = vpop.permute.xlu1 %1016  ;;  %v921_v37 = vpop.permute.xlu0 %920 }
 0x13d   : > { %vm1133_vm0 = vcmp.eq.s32.totalorder %v1017_v41, %v2763_v63  ;;  %vm1101_vm1 = vcmp.eq.s32.totalorder %v921_v37, %v2763_v63  ;;  %v1555_v41 = vld [vmem:[#allocation12 + $0x20] sm:$0xff] }
 0x13e   : > { %1918 = vmatpush3.msk.msra.mxu0 %vm1101_vm1, %v3192_v12  ;;  %1953 = vmatpush3.msk.msra.mxu1 %vm1133_vm0, %v3192_v12 }
 0x140   : > { %v1062_v31 = vpop.permute.xlu1 %1061  ;;  %v966_v42 = vpop.permute.xlu0 %965 }
 0x141   : > { %vm1148_vm2 = vcmp.eq.s32.totalorder %v1062_v31, %v2763_v63  ;;  %vm1116_vm3 = vcmp.eq.s32.totalorder %v966_v42, %v2763_v63 }
 0x142   : > { %1919 = vmatprep.subr.msk.mxu0 %vm1116_vm3, %v3192_v12  ;;  %1954 = vmatprep.subr.msk.mxu1 %vm1148_vm2, %v3192_v12 }
 0x144   : > { %v1014_v43 = vpop.permute.xlu1 %1013  ;;  %v918_v59 = vpop.permute.xlu0 %917 }
 0x145   : > { %vm1132_vm4 = vcmp.eq.s32.totalorder %v1014_v43, %v2763_v63  ;;  %vm1100_vm5 = vcmp.eq.s32.totalorder %v918_v59, %v2763_v63  ;;  %v1888_v59 = vld [vmem:[%s3154_s3] ss:$0 sm:$0xff] }
 0x146   : > { %1920 = vmatpush3.msk.msra.mxu0 %vm1100_vm5, %v3192_v12  ;;  %1955 = vmatpush3.msk.msra.mxu1 %vm1132_vm4, %v3192_v12 }
 0x148   : > { %v1059_v51 = vpop.permute.xlu1 %1058  ;;  %v963_v52 = vpop.permute.xlu0 %962 }
 0x149   : > { %vm1147_vm6 = vcmp.eq.s32.totalorder %v1059_v51, %v2763_v63  ;;  %vm1115_vm13 = vcmp.eq.s32.totalorder %v963_v52, %v2763_v63 }
 0x14a   : > { %1921 = vmatprep.subr.msk.mxu0 %vm1115_vm13, %v3192_v12  ;;  %1956 = vmatprep.subr.msk.mxu1 %vm1147_vm6, %v3192_v12  ;;  %vm2388_vm6 = vmmov 0  }
 0x14c   : > { %v1011_v9 = vpop.permute.xlu1 %1010  ;;  %v915_v13 = vpop.permute.xlu0 %914 }
 0x14d   : > { %vm1131_vm14 = vcmp.eq.s32.totalorder %v1011_v9, %v2763_v63  ;;  %vm1099_vm15 = vcmp.eq.s32.totalorder %v915_v13, %v2763_v63  ;;  %v1570_v13 = vld [vmem:[#allocation12 + $0x98] sm:$0xff] }
 0x14e   : > { %1922 = vmatpush3.msk.msra.mxu0 %vm1099_vm15, %v3192_v12  ;;  %1957 = vmatpush3.msk.msra.mxu1 %vm1131_vm14, %v3192_v12 }
 0x150   : > { %v1056_v48 = vpop.permute.xlu1 %1055  ;;  %v960_v16 = vpop.permute.xlu0 %959 }
 0x151   : > { %vm1146_vm7 = vcmp.eq.s32.totalorder %v1056_v48, %v2763_v63  ;;  %vm1114_vm8 = vcmp.eq.s32.totalorder %v960_v16, %v2763_v63  ;;  %v1554_v48 = vld [vmem:[#allocation12 + $0x18] sm:$0xff]  ;;  %v1569_v16 = vld [vmem:[#allocation12 + $0x90] sm:$0xff] }
 0x152   : > { %1923 = vmatprep.subr.msk.mxu0 %vm1114_vm8, %v3192_v12  ;;  %1958 = vmatprep.subr.msk.mxu1 %vm1146_vm7, %v3192_v12 }
 0x154   : > { %v1008_v49 = vpop.permute.xlu1 %1007  ;;  %v912_v17 = vpop.permute.xlu0 %911 }
 0x155   : > { %vm1130_vm9 = vcmp.eq.s32.totalorder %v1008_v49, %v2763_v63  ;;  %vm1098_vm10 = vcmp.eq.s32.totalorder %v912_v17, %v2763_v63  ;;  %v1553_v49 = vld [vmem:[#allocation12 + $0x10] sm:$0xff]  ;;  %v1568_v17 = vld [vmem:[#allocation12 + $0x88] sm:$0xff] }
 0x156   : > { %1924 = vmatpush3.msk.msra.mxu0 %vm1098_vm10, %v3192_v12  ;;  %1959 = vmatpush3.msk.msra.mxu1 %vm1130_vm9, %v3192_v12 }
 0x158   : > { %v1053_v18 = vpop.permute.xlu1 %1052  ;;  %v957_v19 = vpop.permute.xlu0 %956 }
 0x159   : > { %vm1145_vm11 = vcmp.eq.s32.totalorder %v1053_v18, %v2763_v63  ;;  %vm1113_vm12 = vcmp.eq.s32.totalorder %v957_v19, %v2763_v63  ;;  %v1552_v18 = vld [vmem:[#allocation12 + $0x8] sm:$0xff]  ;;  %v1567_v19 = vld [vmem:[#allocation12 + $0x80] sm:$0xff] }
 0x15a   : > { %1925 = vmatprep.subr.msk.mxu0 %vm1113_vm12, %v3192_v12  ;;  %1960 = vmatprep.subr.msk.mxu1 %vm1145_vm11, %v3192_v12 }
 0x15c   : > { %v1005_v53 = vpop.permute.xlu1 %1004  ;;  %v909_v61 = vpop.permute.xlu0 %908 }
 0x15d   : > { %vm1129_vm0 = vcmp.eq.s32.totalorder %v1005_v53, %v2763_v63  ;;  %vm1097_vm1 = vcmp.eq.s32.totalorder %v909_v61, %v2763_v63  ;;  %v1551_v53 = vld [vmem:[#allocation12] sm:$0xff]  ;;  %v1538_v61 = vstv %s1537_s27  ;;  %s2278_s27 = scalar_lea.vmem %s1676_s18, 128 }
 0x15e   : > { %1926 = vmatpush3.msk.msra.mxu0 %vm1097_vm1, %v3192_v12  ;;  %1961 = vmatpush3.msk.msra.mxu1 %vm1129_vm0, %v3192_v12  ;;  %p2279_p11 = scmp.ne.s32.totalorder %s1676_s18, %s2278_s27 }
 0x160   : > { %v1050_v2 = vpop.permute.xlu1 %1049  ;;  %v954_v6 = vpop.permute.xlu0 %953  ;;  %p2280_p9 = pnand %p2279_p11, %p3197_p13 }
 0x161   : > { %vm1144_vm2 = vcmp.eq.s32.totalorder %v1050_v2, %v2763_v63  ;;  %vm1112_vm3 = vcmp.eq.s32.totalorder %v954_v6, %v2763_v63  ;;  %v1545_v2 = vstv %s1889_s20  ;;  %s2389_s20 = smov [#allocation13]  }
 0x162   : > { %1927 = vmatprep.subr.msk.mxu0 %vm1112_vm3, %v3192_v12  ;;  %1962 = vmatprep.subr.msk.mxu1 %vm1144_vm2, %v3192_v12  ;;  %p2281_p12 = pneg %p2280_p9 }
 0x164   : > { %v1002_v7 = vpop.permute.xlu1 %1001  ;;  %v906_v8 = vpop.permute.xlu0 %905 }
 0x165   : > { %vm1128_vm4 = vcmp.eq.s32.totalorder %v1002_v7, %v2763_v63  ;;  %vm1096_vm5 = vcmp.eq.s32.totalorder %v906_v8, %v2763_v63  ;;  %v1462_v63 = vld [vmem:[#allocation7 + $0x58] sm:$0xff]  ;;  %v1541_v7 = vstv %s1540_s22  ;;  %v1548_v8 = vstv %s1890_s15  ;;  %s2282_s22 = sshll.u32 %s2389_s20, 4  ;;  %s2283_s22 = int_to_ptr.vmem [resolvable:$false] %s2282_s22 }
 0x166   : > { %1928 = vmatpush3.msk.msra.mxu0 %vm1096_vm5, %v3192_v12  ;;  %1963 = vmatpush3.msk.msra.mxu1 %vm1128_vm4, %v3192_v12  ;;  %v1461_v12 = vld [vmem:[#allocation7 + $0x50] sm:$0xff]  ;;  %s2284_s12 = scalar_lea.vmem %s2283_s22, 256  ;;  %p2285_p4 = scmp.lt.s32.totalorder %s1676_s18, %s2283_s22 }
 0x167   : > { %1361 = vmatmul.mubr.f32.vlgmr.msra.gmra.mxu0 %v3024_v32  ;;  %1431 = vmatmul.mubr.f32.vlgmr.msra.gmra.mxu1 %v3060_v58  ;;  %v1460_v32 = vld [vmem:[#allocation7 + $0x48] sm:$0xff]  ;;  %p2286_p8 = scmp.lt.s32.totalorder %s2284_s12, %s2278_s27 }
 0x168   : > { %2019 = vmatprep.subr.mxu0 %v2387_v15  ;;  %2051 = vmatprep.mubr.msk.f32.mxu0 %vm2388_vm6, %v2387_v15 }
 0x169   : > { %2020 = vmatpush3.msra.mxu0 %v1466_v14  ;;  %1984 = vmatprep.subr.mxu1 %v1582_v46  ;;  %p2287_p1 = por %p2286_p8, %p2285_p4 }
 0x16a   : > { %2021 = vmatprep.subr.mxu0 %v2387_v15  ;;  %1985 = vmatpush3.msra.mxu1 %v1566_v11 }
 0x16b   : > { %2022 = vmatpush3.msra.mxu0 %v1465_v21  ;;  %1986 = vmatprep.subr.mxu1 %v1581_v40  ;;  %p2288_p3 = pnand %p2287_p1, %p2281_p12 }
 0x16c   : > { %2023 = vmatprep.subr.mxu0 %v2387_v15  ;;  %1987 = vmatpush3.msra.mxu1 %v1565_v44 }
 0x16d   : > { %2024 = vmatpush3.msra.mxu0 %v1464_v4  ;;  %1988 = vmatprep.subr.mxu1 %v1580_v28 }
 0x16e   : > { %2025 = vmatprep.subr.mxu0 %v2387_v15  ;;  %1989 = vmatpush3.msra.mxu1 %v1564_v50 }
 0x16f   : > { %2026 = vmatpush3.msra.mxu0 %v1463_v62  ;;  %1990 = vmatprep.subr.mxu1 %v1579_v1 }
 0x170   : > { %2027 = vmatprep.subr.mxu0 %v2387_v15  ;;  %1991 = vmatpush3.msra.mxu1 %v1563_v3 }
 0x171   : > { %2028 = vmatpush3.msra.mxu0 %v1462_v63  ;;  %1992 = vmatprep.subr.mxu1 %v1578_v47 }
 0x172   : > { %2029 = vmatprep.subr.mxu0 %v2387_v15  ;;  %1993 = vmatpush3.msra.mxu1 %v1562_v60 }
 0x173   : > { %2030 = vmatpush3.msra.mxu0 %v1461_v12  ;;  %1994 = vmatprep.subr.mxu1 %v1577_v0 }
 0x174   : > { %2031 = vmatprep.subr.mxu0 %v2387_v15  ;;  %1995 = vmatpush3.msra.mxu1 %v1561_v45 }
 0x175   : > { %2032 = vmatpush3.msra.mxu0 %v1460_v32  ;;  %1996 = vmatprep.subr.mxu1 %v1576_v39 }
 0x176   : > { %2033 = vmatprep.subr.mxu0 %v2387_v15  ;;  %1997 = vmatpush3.msra.mxu1 %v1560_v26 }
 0x177   : > { %2034 = vmatpush3.msra.mxu0 %v1459_v29  ;;  %1998 = vmatprep.subr.mxu1 %v1575_v54  ;;  %v1891_v29 = vld [vmem:[%s3159_s8] ss:$0 sm:$0xff] }
 0x178   : > { %2035 = vmatprep.subr.mxu0 %v2387_v15  ;;  %1999 = vmatpush3.msra.mxu1 %v1559_v38 }
 0x179   : > { %2036 = vmatpush3.msra.mxu0 %v1458_v23  ;;  %2000 = vmatprep.subr.mxu1 %v1574_v20 }
 0x17a   : > { %2037 = vmatprep.subr.mxu0 %v2387_v15  ;;  %2001 = vmatpush3.msra.mxu1 %v1558_v34 }
 0x17b   : > { %2038 = vmatpush3.msra.mxu0 %v1457_v24  ;;  %2002 = vmatprep.subr.mxu1 %v1573_v35 }
 0x17c   : > { %2039 = vmatprep.subr.mxu0 %v2387_v15  ;;  %2003 = vmatpush3.msra.mxu1 %v1557_v55 }
 0x17d   : > { %2040 = vmatpush3.msra.mxu0 %v1456_v25  ;;  %2004 = vmatprep.subr.mxu1 %v1572_v56 }
 0x17e   : > { %2041 = vmatprep.subr.mxu0 %v2387_v15  ;;  %2005 = vmatpush3.msra.mxu1 %v1556_v57 }
 0x17f   : > { %2042 = vmatpush3.msra.mxu0 %v1455_v10  ;;  %2006 = vmatprep.subr.mxu1 %v1571_v36 }
 0x180   : > { %2043 = vmatprep.subr.mxu0 %v2387_v15  ;;  %2007 = vmatpush3.msra.mxu1 %v1555_v41 }
 0x181   : > { %2044 = vmatpush3.msra.mxu0 %v1454_v30  ;;  %2008 = vmatprep.subr.mxu1 %v1570_v13 }
 0x182   : > { %2045 = vmatprep.subr.mxu0 %v2387_v15  ;;  %2009 = vmatpush3.msra.mxu1 %v1554_v48 }
 0x183   : > { %2046 = vmatpush3.msra.mxu0 %v1453_v22  ;;  %2010 = vmatprep.subr.mxu1 %v1569_v16 }
 0x184   : > { %2047 = vmatprep.subr.mxu0 %v2387_v15  ;;  %2011 = vmatpush3.msra.mxu1 %v1553_v49 }
 0x185   : > { %2048 = vmatpush3.msra.mxu0 %v1452_v27  ;;  %2012 = vmatprep.subr.mxu1 %v1568_v17 }
 0x186   : > { %2049 = vmatprep.subr.mxu0 %v2387_v15  ;;  %2013 = vmatpush3.msra.mxu1 %v1552_v18 }
 0x187   : > { %2050 = vmatpush3.msra.mxu0 %v1451_v33  ;;  %2014 = vmatprep.subr.mxu1 %v1567_v19 }
 0x188   : > { %2015 = vmatpush3.msra.mxu1 %v1551_v53 }
 0x227   : > { %v1929_v37 = vpop.f32.mrf.mxu0  ;;  %v1964_v5 = vpop.f32.mrf.mxu1 }
 0x229   : > { %v1930_v58 = vpop.f32.mrf.mxu0  ;;  %v1965_v31 = vpop.f32.mrf.mxu1 }
 0x22a   : > { %v1931_v42 = vadd.f32 %v1930_v58, %v1929_v37  ;;  %v1966_v43 = vadd.f32 %v1965_v31, %v1964_v5 }
 0x22c   : > { %v1433_v51 = vadd.f32 %v1966_v43, %v1931_v42 }
 0x22e   : > { %v1449_v52 = vadd.f32 %v1888_v59, %v1433_v51 }
 0x230   : > { %v1450_v9 = vmax.f32 %v1449_v52, 0.0 }
 0x232   : > { %2052 = vmatmul.mubr.f32.vlgmr.msra.gmra.mxu0 %v1450_v9 }
 0x2f2   : > { %v1533_v6 = vpop.f32.mrf.mxu0 }
 0x2f3   : > { %v1539_v14 = vmul.f32 %v1538_v61, %v1533_v6  ;;  %v1546_v15 = vmul.f32 %v1545_v2, %v1533_v6 }
 0x2f4   : > { %v2053_v21 = vpop.f32.mrf.mxu0 }
 0x2f5   : > { %v1542_v4 = vadd.f32 %v1541_v7, %v1539_v14  ;;  %v1549_v62 = vadd.f32 %v1548_v8, %v1546_v15 }
 0x2f7   : > { %v1543_v63 = vmax.f32 %v1542_v4, 0.0  ;;  %v1550_v12 = vmax.f32 %v1549_v62, 0.0 }
 0x2f9   : > { %1654 = vmatprep.mubr.f32.mxu1 %v1550_v12 }
 0x2fa   : > { %1655 = vmatmul.mubr.f32.vlgmr.msra.gmra.mxu1 %v1543_v63 }
 0x3ba   : > { %v2016_v32 = vpop.f32.mrf.mxu1 }
 0x3bc   : > { %v2017_v23 = vpop.f32.mrf.mxu1 }
 0x3bd   : > { %v2018_v24 = vadd.f32 %v2017_v23, %v2016_v32 }
 0x3bf   : > { %v1657_v25 = vadd.f32 %v2018_v24, %v1891_v29 }
 0x3c1   : > { %1660 = vst [vmem:[%s422_s26] sm:$0xff] %v1657_v25 }
 0x3c2   : > { %2291 = shalt.err (!%p2288_p3)
}
 0x3c3   : > { %s2292_s15 = scalar_lea.hbm %s1673_s17, 128  ;;  %s2296_s29 = scalar_lea.hbm %s3160_s9, 256 }
 0x3c4   : > { %p2293_p2 = scmp.ne.s32.totalorder %s1673_s17, %s2292_s15  ;;  %p2297_p7 = scmp.lt.s32.totalorder %s1673_s17, %s3160_s9 }
 0x3c5   : > { %p2298_p0 = scmp.lt.s32.totalorder %s2296_s29, %s2292_s15 }
 0x3c6   : > { %p2294_p5 = pnand %p2293_p2, %p3197_p13 }
 0x3c7   : > { %p2299_p10 = por %p2298_p0, %p2297_p7 }
 0x3c8   : > { %p2295_p6 = pneg %p2294_p5 }
 0x3ca   : > { %p2300_p11 = pnand %p2299_p10, %p2295_p6 }
 0x3cc   : > { %2303 = shalt.err (!%p2300_p11)
}
 0x3cd   : > { %2074 = dma.vmem_to_hbm [thread:$0]  (%p3197_p13), %s1676_s18, 128, %s1673_s17, %s1662_s23  }
 0x3ce PF: > { %p2106_p9 = scmp.ge.s32.totalorder %s2374_s14, 2  ;;  %s1687_s26 = sand.u32 1, %s2354_s30  }
 0x3cf   : > { %p3198_p12 = scmp.ne.s32.totalorder %s3179_s21, 0  ;;  %s1688_s28 = scalar_lea.sflag [#allocation5], %s1687_s26 }
 0x3d1   : > { %p2093_p4 = pnand %p2106_p9, %p3198_p12 }
 0x3d3   : > { %p2094_p8 = pneg %p2093_p4 }
 0x3d5   : > { %2349 = dma.done.wait (%p2094_p8), %s1688_s28, 128  }
 0x3d6   : > { %2351 = vsyncadd (%p2094_p8), %s1688_s28, 4294967168  ;;  %s26_s14 = sadd.s32 1, %s2374_s14   ;;  %s3199_s13 = sld [smem:[#allocation20_spill]] }
 0x3d7   : > { %p23_p1 = scmp.ge.s32.totalorder %s26_s14, 4   ;;  %s3200_s11 = sld [smem:[#allocation23_spill]] }
 0x3d8   : > { %s3201_s12 = sld [smem:[#allocation21_spill]]  ;;  %s3203_s30 = smov %s2358_s10 }
 0x3d9   : > { %s3202_s19 = sld [smem:[#allocation22_spill]] }
 0x3db   :  { %25 = sbr.rel (!%p23_p1) target bundleno = 8 (0x8), region = 123 }
 0x3dc   : > { %s3204_s10 = smov %s3199_s13 }
 0x3df   : > { %s3205_s13 = smov %s3202_s19 }
 0x3e0   :  { %1693 = vsyncpa [#allocation4], 1 }
 0x3e1   :  { %1695 = vsyncpa [#allocation4 + $0x1], 1 }
 0x3e2   :  { %1696 = vsyncpa [#allocation8], 1 }
 0x3e3   :  { %1697 = vsyncpa [#allocation5], 1 }
 0x3e4   :  { %1699 = vsyncpa [#allocation5 + $0x1], 1 }
 0x3e5   :  { %1700 = vsyncpa [#allocation6], 1 }
 0x3e6   :  { %1702 = vsyncpa [#allocation6 + $0x1], 1 }
 0x3e7   :  { %1703 = vsyncpa [#allocation11], 1 }

</bundles_post_ra>
